<compile_context>
chip_gen: v7x
topology: tpu7x:2x2x1
jax: 0.10.0
libtpu: 0.0.40
codegen_flags: <defaults>
</compile_context>

<pallas_src>
import functools

import jax
import jax.numpy as jnp
import numpy as np
from jax.experimental import pallas as pl
from jax.experimental.pallas import tpu as pltpu


# ----------------------------------------------------------------------------
# Single fused kernel: hoisted x-projection + 2 sentences x 2 directions x T
# recurrence steps + head-row gather + MLP head.
# ----------------------------------------------------------------------------
def _siamese_kernel(x_ref, wx_ref, bf_ref, bb_ref, whh_ref,
                    w1_ref, b1_ref, w2_ref, b2_ref, out_ref,
                    xproj_sc, hall_sc):
    T = out_ref.shape[0]
    H = whh_ref.shape[0]
    G = 4 * H                       # gate width per direction
    NB = x_ref.shape[0] // T        # 4B stacked rows: [s1_f; s2_f; s1_b; s2_b]
    TB = NB // 2                    # 2B (forward rows per step)
    B = NB // 4

    # ---------------- Pre-loop: hoisted input->gate projection ----------------
    # x_ref rows are block-diagonally padded ([x | 0] for fwd rows, [0 | x] for
    # bwd rows), so ONE well-pipelined (T*NB, 2D) x (2D, 4H) matmul yields the
    # per-row projection for both directions; the summed LSTM bias is folded in
    # here so the recurrence carries no per-step bias add.
    row_all = jax.lax.broadcasted_iota(jnp.int32, (T * NB, G), 0)
    if NB & (NB - 1) == 0:
        grp = row_all & (NB - 1)
    else:
        grp = row_all % NB
    bias_all = jnp.where(grp < TB,
                         jnp.broadcast_to(bf_ref[...], (T * NB, G)),
                         jnp.broadcast_to(bb_ref[...], (T * NB, G)))
    xproj_sc[...] = jnp.dot(x_ref[...], wx_ref[...],
                            preferred_element_type=jnp.float32) + bias_all

    # ---------------- Hoisted loop constants ----------------
    w_hh = whh_ref[...]                                           # (H, 8H) fwd|bwd
    row = jax.lax.broadcasted_iota(jnp.int32, (NB, G), 0)
    lane = jax.lax.broadcasted_iota(jnp.int32, (NB, G), 1)
    fwd_rows = row < TB                                           # sublane mask
    g_lane = (lane >= 2 * H) & (lane < 3 * H)                     # cell-gate lanes
    gate_scale = jnp.where(g_lane, 1.0, 0.5).astype(jnp.float32)

    # ------------- Recurrence: both directions, both sentences, fused ----------
    def step(i, carry):
        h, c = carry                                              # (NB, H) each
        base = pl.multiple_of(i * NB, NB)
        xrow = xproj_sc[pl.ds(base, NB), :]                       # (NB, 4H), aligned
        g_full = jnp.dot(h, w_hh, preferred_element_type=jnp.float32)   # (NB, 8H)
        gates = jnp.where(fwd_rows, g_full[:, 0:G], g_full[:, G:2 * G]) + xrow
        # Single EUP pass: sigmoid(x) = 0.5*tanh(x/2) + 0.5 for i/f/o lanes,
        # plain tanh for the cell-gate lanes (pre-scaled by gate_scale).
        t = jnp.tanh(gates * gate_scale)
        act = jnp.where(g_lane, t, 0.5 * t + 0.5)
        i_g = act[:, 0:H]
        f_g = act[:, H:2 * H]
        g_g = act[:, 2 * H:3 * H]
        o_g = act[:, 3 * H:4 * H]
        c_new = f_g * c + i_g * g_g
        h_new = o_g * jnp.tanh(c_new)
        hall_sc[pl.ds(base, NB), :] = h_new                       # one aligned store
        return h_new, c_new

    h0 = jnp.zeros((NB, H), jnp.float32)
    c0 = jnp.zeros((NB, H), jnp.float32)
    jax.lax.fori_loop(0, T, step, (h0, c0), unroll=True)

    # ------------- Post-loop: head-row gather + backward time reversal ---------
    # The head consumes only batch row B-1 of each stream (the module's quirk);
    # select those rows, and time-reverse the backward halves, with tiny
    # selection matmuls built from iota masks (no per-step extraction).
    hall = hall_sc[...]                                           # (T*NB, H)
    r_idx = jax.lax.broadcasted_iota(jnp.int32, (T, T * NB), 1)
    t_idx = jax.lax.broadcasted_iota(jnp.int32, (T, T * NB), 0)

    def pick(target_rows):
        sel = jnp.where(r_idx == target_rows, 1.0, 0.0).astype(jnp.float32)
        return jnp.dot(sel, hall, preferred_element_type=jnp.float32)   # (T, H)

    x_head = jnp.concatenate(
        [pick(t_idx * NB + (B - 1)),                  # sent1 fwd, batch row B-1
         pick(t_idx * NB + (2 * B - 1)),              # sent2 fwd
         pick((T - 1 - t_idx) * NB + (3 * B - 1)),    # sent1 bwd (time-reversed)
         pick((T - 1 - t_idx) * NB + (4 * B - 1))],   # sent2 bwd (time-reversed)
        axis=1)                                       # (T, 4H)

    # ------- MLP head: Linear -> BatchNorm1d (training batch stats) -> ReLU -> Linear
    z = jnp.dot(x_head, w1_ref[...], preferred_element_type=jnp.float32) + b1_ref[...]
    mean = jnp.mean(z, axis=0, keepdims=True)
    var = jnp.mean((z - mean) * (z - mean), axis=0, keepdims=True)   # biased var
    a = jnp.maximum((z - mean) * jax.lax.rsqrt(var + 1e-5), 0.0)     # gamma=1, beta=0
    out_ref[...] = (jnp.dot(a, w2_ref[...], preferred_element_type=jnp.float32)
                    + b2_ref[...]).astype(out_ref.dtype)


def siamese_nli_forward(sent1, sent2, kp):
    """sent1, sent2: (T, B, D) time-major. Returns (T, 3) logits."""
    T, B, D = sent1.shape
    H = kp["w_hh"].shape[0]
    G = 4 * H
    NB = 4 * B

    # Pre-stack both sentences x both directions into one (T*NB, 2D) slab whose
    # per-step row groups are [s1[t]; s2[t]; s1[T-1-t]; s2[T-1-t]]; forward rows
    # carry [x | 0] and backward rows [0 | x] so a single stacked weight handles
    # both directions' input projections in one matmul inside the kernel.
    x_fwd = jnp.concatenate([sent1, sent2], axis=1)                # (T, 2B, D)
    x_bwd = jnp.concatenate([sent1[::-1], sent2[::-1]], axis=1)    # (T, 2B, D)
    zpad = jnp.zeros_like(x_fwd)
    x_all = jnp.concatenate(
        [jnp.concatenate([x_fwd, zpad], axis=2),
         jnp.concatenate([zpad, x_bwd], axis=2)], axis=1)          # (T, NB, 2D)
    x_all = x_all.reshape(T * NB, 2 * D)

    vmem = pl.BlockSpec(memory_space=pltpu.MemorySpace.VMEM)
    return pl.pallas_call(
        _siamese_kernel,
        out_shape=jax.ShapeDtypeStruct((T, 3), jnp.float32),
        in_specs=[vmem] * 9,
        out_specs=vmem,
        scratch_shapes=[
            pltpu.VMEM((T * NB, G), jnp.float32),   # hoisted x-projection (+bias)
            pltpu.VMEM((T * NB, H), jnp.float32),   # all hidden states across time
        ],
    )(x_all, kp["w_x"], kp["b_f"], kp["b_b"], kp["w_hh"],
      kp["w1p_T"], kp["b1"], kp["w2_T"], kp["b2"])


# ----------------------------------------------------------------------------
# Host-side parameter packing (one-time): transpose / stack / permute weights
# into the kernel-friendly layout.
# ----------------------------------------------------------------------------
def pack_params(raw):
    H = raw["whh_f"].shape[1]

    # Kernel feature order [s1_f, s2_f, s1_b, s2_b] vs. PyTorch's
    # [s1_f, s1_b, s2_f, s2_b]: permute w1's input rows accordingly.
    perm = np.concatenate([np.arange(0, H), np.arange(2 * H, 3 * H),
                           np.arange(H, 2 * H), np.arange(3 * H, 4 * H)])
    return {
        # Input->gate weights stacked along K for the block-diag padded input.
        "w_x": jnp.concatenate([raw["wih_f"].T, raw["wih_b"].T], axis=0),  # (2D,4H)
        # Recurrent weights lane-concatenated: one per-step dot for fwd+bwd.
        "w_hh": jnp.concatenate([raw["whh_f"].T, raw["whh_b"].T], axis=1),  # (H,8H)
        "b_f": (raw["bih_f"] + raw["bhh_f"]).reshape(1, 4 * H),
        "b_b": (raw["bih_b"] + raw["bhh_b"]).reshape(1, 4 * H),
        "w1p_T": raw["w1"].T[perm, :],
        "b1": raw["b1"].reshape(1, -1),
        "w2_T": raw["w2"].T,
        "b2": raw["b2"].reshape(1, -1),
    }


# ----------------------------------------------------------------------------
# Pure-JAX reference (uses raw PyTorch-layout params, independent of the
# kernel's packing/permutation tricks).
# ----------------------------------------------------------------------------
def _lstm_dir_ref(x, wih, whh, bih, bhh):
    H = whh.shape[1]
    B = x.shape[1]

    def step(carry, xt):
        h, c = carry
        g = xt @ wih.T + h @ whh.T + bih + bhh
        i = jax.nn.sigmoid(g[:, :H])
        f = jax.nn.sigmoid(g[:, H:2 * H])
        gg = jnp.tanh(g[:, 2 * H:3 * H])
        o = jax.nn.sigmoid(g[:, 3 * H:])
        c = f * c + i * gg
        h = o * jnp.tanh(c)
        return (h, c), h

    init = (jnp.zeros((B, H), jnp.float32), jnp.zeros((B, H), jnp.float32))
    _, hs = jax.lax.scan(step, init, x)
    return hs


def siamese_nli_ref(s1, s2, raw):
    def bilstm(x):
        hf = _lstm_dir_ref(x, raw["wih_f"], raw["whh_f"], raw["bih_f"], raw["bhh_f"])
        hb = jnp.flip(_lstm_dir_ref(jnp.flip(x, 0), raw["wih_b"], raw["whh_b"],
                                    raw["bih_b"], raw["bhh_b"]), 0)
        return jnp.concatenate([hf, hb], axis=-1)

    o1, o2 = bilstm(s1), bilstm(s2)
    B = o1.shape[1]
    x = jnp.concatenate([o1[:, B - 1, :], o2[:, B - 1, :]], axis=1)  # (T, 4H)
    z = x @ raw["w1"].T + raw["b1"]
    mean = jnp.mean(z, axis=0, keepdims=True)
    var = jnp.mean((z - mean) ** 2, axis=0, keepdims=True)
    a = jnp.maximum((z - mean) * jax.lax.rsqrt(var + 1e-5), 0.0)
    return a @ raw["w2"].T + raw["b2"]


# ----------------------------------------------------------------------------
# Deterministic parameter init (PyTorch layouts, shapes scaled down).
# ----------------------------------------------------------------------------
def init_raw_params(key, input_size, hidden_size):
    D, H = input_size, hidden_size
    ks = jax.random.split(key, 10)
    s = 1.0 / np.sqrt(H)

    def u(k, shape, bound):
        return jax.random.uniform(k, shape, jnp.float32, -bound, bound)

    bound1 = np.sqrt(6.0 / (4 * H + 128))
    bound2 = np.sqrt(6.0 / (128 + 3))
    return {
        "wih_f": u(ks[0], (4 * H, D), s), "whh_f": u(ks[1], (4 * H, H), s),
        "bih_f": u(ks[2], (4 * H,), s), "bhh_f": u(ks[3], (4 * H,), s),
        "wih_b": u(ks[4], (4 * H, D), s), "whh_b": u(ks[5], (4 * H, H), s),
        "bih_b": u(ks[6], (4 * H,), s), "bhh_b": u(ks[7], (4 * H,), s),
        "w1": u(ks[8], (128, 4 * H), bound1), "b1": jnp.zeros((128,), jnp.float32),
        "w2": u(ks[9], (3, 128), bound2), "b2": jnp.zeros((3,), jnp.float32),
    }


if __name__ == "__main__":
    # Small shapes consistent with the module: time-major (T, B, D); 4H = 128.
    T, B, D, H = 8, 2, 64, 32

    key = jax.random.PRNGKey(0)
    k_p, k_s1, k_s2 = jax.random.split(key, 3)
    raw = init_raw_params(k_p, D, H)
    packed = pack_params(raw)
    sent1 = jax.random.normal(k_s1, (T, B, D), jnp.float32)
    sent2 = jax.random.normal(k_s2, (T, B, D), jnp.float32)

    fwd = jax.jit(functools.partial(siamese_nli_forward, kp=packed))
    out = jax.block_until_ready(fwd(sent1, sent2))
    assert out.shape == (T, 3), out.shape

    ref = siamese_nli_ref(sent1, sent2, raw)
    np.testing.assert_allclose(np.asarray(out), np.asarray(ref), rtol=2e-2, atol=2e-2)

    print("KERNEL_OK")
</pallas_src>

<mosaic_0001>
module attributes {stable_mosaic.version = 11 : i64} {
  func.func @_siamese_kernel(%arg0: memref<64x128xf32, #tpu.memory_space<vmem>>, %arg1: memref<128x128xf32, #tpu.memory_space<vmem>>, %arg2: memref<1x128xf32, #tpu.memory_space<vmem>>, %arg3: memref<1x128xf32, #tpu.memory_space<vmem>>, %arg4: memref<32x256xf32, #tpu.memory_space<vmem>>, %arg5: memref<128x128xf32, #tpu.memory_space<vmem>>, %arg6: memref<1x128xf32, #tpu.memory_space<vmem>>, %arg7: memref<128x3xf32, #tpu.memory_space<vmem>>, %arg8: memref<1x3xf32, #tpu.memory_space<vmem>>, %arg9: memref<8x3xf32, #tpu.memory_space<vmem>>, %arg10: memref<64x128xf32, #tpu.memory_space<vmem>>, %arg11: memref<64x32xf32, #tpu.memory_space<vmem>>) attributes {dimension_semantics = [], scalar_prefetch = 0 : i64, scratch_operands = 2 : i64, tpu.core_type = #tpu.core_type<tc>} {
    %0 = tpu.iota {dimensions = array<i32: 0>} : vector<64x128xi32>
    %c7_i32 = arith.constant 7 : i32
    %1 = vector.broadcast %c7_i32 : i32 to vector<64x128xi32>
    %2 = arith.andi %0, %1 : vector<64x128xi32>
    %c4_i32 = arith.constant 4 : i32
    %3 = vector.broadcast %c4_i32 : i32 to vector<64x128xi32>
    %4 = arith.cmpi slt, %2, %3 : vector<64x128xi32>
    %c0 = arith.constant 0 : index
    %c0_0 = arith.constant 0 : index
    %5 = vector.load %arg2[%c0, %c0_0] : memref<1x128xf32, #tpu.memory_space<vmem>>, vector<1x128xf32>
    %6 = vector.shape_cast %5 : vector<1x128xf32> to vector<1x128xf32>
    %7 = vector.broadcast %6 : vector<1x128xf32> to vector<64x128xf32>
    %c0_1 = arith.constant 0 : index
    %c0_2 = arith.constant 0 : index
    %8 = vector.load %arg3[%c0_1, %c0_2] : memref<1x128xf32, #tpu.memory_space<vmem>>, vector<1x128xf32>
    %9 = vector.shape_cast %8 : vector<1x128xf32> to vector<1x128xf32>
    %10 = vector.broadcast %9 : vector<1x128xf32> to vector<64x128xf32>
    %11 = arith.select %4, %7, %10 : vector<64x128xi1>, vector<64x128xf32>
    %c0_3 = arith.constant 0 : index
    %c0_4 = arith.constant 0 : index
    %12 = vector.load %arg0[%c0_3, %c0_4] : memref<64x128xf32, #tpu.memory_space<vmem>>, vector<64x128xf32>
    %c0_5 = arith.constant 0 : index
    %c0_6 = arith.constant 0 : index
    %13 = vector.load %arg1[%c0_5, %c0_6] : memref<128x128xf32, #tpu.memory_space<vmem>>, vector<128x128xf32>
    %cst = arith.constant dense<0.000000e+00> : vector<64x128xf32>
    %14 = tpu.matmul %12, %13, %cst {dimension_numbers = #tpu.dot_dimension_numbers<[1], [0], [0], [1], [0, 0, 1, 1], [], []>} : vector<64x128xf32>, vector<128x128xf32>, vector<64x128xf32> -> vector<64x128xf32>
    %15 = arith.addf %14, %11 : vector<64x128xf32>
    %c0_7 = arith.constant 0 : index
    %c0_8 = arith.constant 0 : index
    %16 = vector.load %arg10[%c0_7, %c0_8] : memref<64x128xf32, #tpu.memory_space<vmem>>, vector<64x128xf32>
    tpu.vector_store %arg10[%c0_7, %c0_8], %15 {strides = array<i32>} : memref<64x128xf32, #tpu.memory_space<vmem>>, vector<64x128xf32>,
    %c0_9 = arith.constant 0 : index
    %c0_10 = arith.constant 0 : index
    %17 = vector.load %arg4[%c0_9, %c0_10] : memref<32x256xf32, #tpu.memory_space<vmem>>, vector<32x256xf32>
    %18 = tpu.iota {dimensions = array<i32: 0>} : vector<8x128xi32>
    %19 = tpu.iota {dimensions = array<i32: 1>} : vector<8x128xi32>
    %c4_i32_11 = arith.constant 4 : i32
    %20 = vector.broadcast %c4_i32_11 : i32 to vector<8x128xi32>
    %21 = arith.cmpi slt, %18, %20 : vector<8x128xi32>
    %c64_i32 = arith.constant 64 : i32
    %22 = vector.broadcast %c64_i32 : i32 to vector<8x128xi32>
    %23 = arith.cmpi sge, %19, %22 : vector<8x128xi32>
    %c96_i32 = arith.constant 96 : i32
    %24 = vector.broadcast %c96_i32 : i32 to vector<8x128xi32>
    %25 = arith.cmpi slt, %19, %24 : vector<8x128xi32>
    %26 = arith.andi %23, %25 : vector<8x128xi1>
    %cst_12 = arith.constant 1.000000e+00 : f32
    %cst_13 = arith.constant 5.000000e-01 : f32
    %27 = vector.broadcast %cst_12 : f32 to vector<8x128xf32>
    %28 = vector.broadcast %cst_13 : f32 to vector<8x128xf32>
    %29 = arith.select %26, %27, %28 : vector<8x128xi1>, vector<8x128xf32>
    %cst_14 = arith.constant 0.000000e+00 : f32
    %30 = vector.broadcast %cst_14 : f32 to vector<8x32xf32>
    %cst_15 = arith.constant 0.000000e+00 : f32
    %31 = vector.broadcast %cst_15 : f32 to vector<8x32xf32>
    %c0_i32 = arith.constant 0 : i32
    %c8_i32 = arith.constant 8 : i32
    %32 = arith.muli %c0_i32, %c8_i32 : i32
    %33 = tpu.assume_multiple %32, 8 : i32
    %34 = arith.index_cast %33 : i32 to index
    %c0_16 = arith.constant 0 : index
    %35 = vector.load %arg10[%34, %c0_16] : memref<64x128xf32, #tpu.memory_space<vmem>>, vector<8x128xf32>
    %cst_17 = arith.constant dense<0.000000e+00> : vector<8x256xf32>
    %36 = tpu.matmul %30, %17, %cst_17 {dimension_numbers = #tpu.dot_dimension_numbers<[1], [0], [0], [1], [0, 0, 1, 1], [], []>} : vector<8x32xf32>, vector<32x256xf32>, vector<8x256xf32> -> vector<8x256xf32>
    %37 = vector.extract_strided_slice %36 {offsets = [0, 0], sizes = [8, 128], strides = [1, 1]} : vector<8x256xf32> to vector<8x128xf32>
    %38 = vector.extract_strided_slice %36 {offsets = [0, 128], sizes = [8, 128], strides = [1, 1]} : vector<8x256xf32> to vector<8x128xf32>
    %39 = arith.select %21, %37, %38 : vector<8x128xi1>, vector<8x128xf32>
    %40 = arith.addf %39, %35 : vector<8x128xf32>
    %41 = arith.mulf %40, %29 : vector<8x128xf32>
    %42 = math.tanh %41 : vector<8x128xf32>
    %cst_18 = arith.constant 5.000000e-01 : f32
    %43 = vector.broadcast %cst_18 : f32 to vector<8x128xf32>
    %44 = arith.mulf %43, %42 : vector<8x128xf32>
    %cst_19 = arith.constant 5.000000e-01 : f32
    %45 = vector.broadcast %cst_19 : f32 to vector<8x128xf32>
    %46 = arith.addf %44, %45 : vector<8x128xf32>
    %47 = arith.select %26, %42, %46 : vector<8x128xi1>, vector<8x128xf32>
    %48 = vector.extract_strided_slice %47 {offsets = [0, 0], sizes = [8, 32], strides = [1, 1]} : vector<8x128xf32> to vector<8x32xf32>
    %49 = vector.extract_strided_slice %47 {offsets = [0, 32], sizes = [8, 32], strides = [1, 1]} : vector<8x128xf32> to vector<8x32xf32>
    %50 = vector.extract_strided_slice %47 {offsets = [0, 64], sizes = [8, 32], strides = [1, 1]} : vector<8x128xf32> to vector<8x32xf32>
    %51 = vector.extract_strided_slice %47 {offsets = [0, 96], sizes = [8, 32], strides = [1, 1]} : vector<8x128xf32> to vector<8x32xf32>
    %52 = arith.mulf %49, %31 : vector<8x32xf32>
    %53 = arith.mulf %48, %50 : vector<8x32xf32>
    %54 = arith.addf %52, %53 : vector<8x32xf32>
    %55 = math.tanh %54 : vector<8x32xf32>
    %56 = arith.mulf %51, %55 : vector<8x32xf32>
    %57 = arith.index_cast %33 : i32 to index
    %c0_20 = arith.constant 0 : index
    %58 = vector.load %arg11[%57, %c0_20] : memref<64x32xf32, #tpu.memory_space<vmem>>, vector<8x32xf32>
    tpu.vector_store %arg11[%57, %c0_20], %56 {strides = array<i32>} : memref<64x32xf32, #tpu.memory_space<vmem>>, vector<8x32xf32>,
    %c1_i32 = arith.constant 1 : i32
    %c8_i32_21 = arith.constant 8 : i32
    %59 = arith.muli %c1_i32, %c8_i32_21 : i32
    %60 = tpu.assume_multiple %59, 8 : i32
    %61 = arith.index_cast %60 : i32 to index
    %c0_22 = arith.constant 0 : index
    %62 = vector.load %arg10[%61, %c0_22] : memref<64x128xf32, #tpu.memory_space<vmem>>, vector<8x128xf32>
    %cst_23 = arith.constant dense<0.000000e+00> : vector<8x256xf32>
    %63 = tpu.matmul %56, %17, %cst_23 {dimension_numbers = #tpu.dot_dimension_numbers<[1], [0], [0], [1], [0, 0, 1, 1], [], []>} : vector<8x32xf32>, vector<32x256xf32>, vector<8x256xf32> -> vector<8x256xf32>
    %64 = vector.extract_strided_slice %63 {offsets = [0, 0], sizes = [8, 128], strides = [1, 1]} : vector<8x256xf32> to vector<8x128xf32>
    %65 = vector.extract_strided_slice %63 {offsets = [0, 128], sizes = [8, 128], strides = [1, 1]} : vector<8x256xf32> to vector<8x128xf32>
    %66 = arith.select %21, %64, %65 : vector<8x128xi1>, vector<8x128xf32>
    %67 = arith.addf %66, %62 : vector<8x128xf32>
    %68 = arith.mulf %67, %29 : vector<8x128xf32>
    %69 = math.tanh %68 : vector<8x128xf32>
    %cst_24 = arith.constant 5.000000e-01 : f32
    %70 = vector.broadcast %cst_24 : f32 to vector<8x128xf32>
    %71 = arith.mulf %70, %69 : vector<8x128xf32>
    %cst_25 = arith.constant 5.000000e-01 : f32
    %72 = vector.broadcast %cst_25 : f32 to vector<8x128xf32>
    %73 = arith.addf %71, %72 : vector<8x128xf32>
    %74 = arith.select %26, %69, %73 : vector<8x128xi1>, vector<8x128xf32>
    %75 = vector.extract_strided_slice %74 {offsets = [0, 0], sizes = [8, 32], strides = [1, 1]} : vector<8x128xf32> to vector<8x32xf32>
    %76 = vector.extract_strided_slice %74 {offsets = [0, 32], sizes = [8, 32], strides = [1, 1]} : vector<8x128xf32> to vector<8x32xf32>
    %77 = vector.extract_strided_slice %74 {offsets = [0, 64], sizes = [8, 32], strides = [1, 1]} : vector<8x128xf32> to vector<8x32xf32>
    %78 = vector.extract_strided_slice %74 {offsets = [0, 96], sizes = [8, 32], strides = [1, 1]} : vector<8x128xf32> to vector<8x32xf32>
    %79 = arith.mulf %76, %54 : vector<8x32xf32>
    %80 = arith.mulf %75, %77 : vector<8x32xf32>
    %81 = arith.addf %79, %80 : vector<8x32xf32>
    %82 = math.tanh %81 : vector<8x32xf32>
    %83 = arith.mulf %78, %82 : vector<8x32xf32>
    %84 = arith.index_cast %60 : i32 to index
    %c0_26 = arith.constant 0 : index
    %85 = vector.load %arg11[%84, %c0_26] : memref<64x32xf32, #tpu.memory_space<vmem>>, vector<8x32xf32>
    tpu.vector_store %arg11[%84, %c0_26], %83 {strides = array<i32>} : memref<64x32xf32, #tpu.memory_space<vmem>>, vector<8x32xf32>,
    %c2_i32 = arith.constant 2 : i32
    %c8_i32_27 = arith.constant 8 : i32
    %86 = arith.muli %c2_i32, %c8_i32_27 : i32
    %87 = tpu.assume_multiple %86, 8 : i32
    %88 = arith.index_cast %87 : i32 to index
    %c0_28 = arith.constant 0 : index
    %89 = vector.load %arg10[%88, %c0_28] : memref<64x128xf32, #tpu.memory_space<vmem>>, vector<8x128xf32>
    %cst_29 = arith.constant dense<0.000000e+00> : vector<8x256xf32>
    %90 = tpu.matmul %83, %17, %cst_29 {dimension_numbers = #tpu.dot_dimension_numbers<[1], [0], [0], [1], [0, 0, 1, 1], [], []>} : vector<8x32xf32>, vector<32x256xf32>, vector<8x256xf32> -> vector<8x256xf32>
    %91 = vector.extract_strided_slice %90 {offsets = [0, 0], sizes = [8, 128], strides = [1, 1]} : vector<8x256xf32> to vector<8x128xf32>
    %92 = vector.extract_strided_slice %90 {offsets = [0, 128], sizes = [8, 128], strides = [1, 1]} : vector<8x256xf32> to vector<8x128xf32>
    %93 = arith.select %21, %91, %92 : vector<8x128xi1>, vector<8x128xf32>
    %94 = arith.addf %93, %89 : vector<8x128xf32>
    %95 = arith.mulf %94, %29 : vector<8x128xf32>
    %96 = math.tanh %95 : vector<8x128xf32>
    %cst_30 = arith.constant 5.000000e-01 : f32
    %97 = vector.broadcast %cst_30 : f32 to vector<8x128xf32>
    %98 = arith.mulf %97, %96 : vector<8x128xf32>
    %cst_31 = arith.constant 5.000000e-01 : f32
    %99 = vector.broadcast %cst_31 : f32 to vector<8x128xf32>
    %100 = arith.addf %98, %99 : vector<8x128xf32>
    %101 = arith.select %26, %96, %100 : vector<8x128xi1>, vector<8x128xf32>
    %102 = vector.extract_strided_slice %101 {offsets = [0, 0], sizes = [8, 32], strides = [1, 1]} : vector<8x128xf32> to vector<8x32xf32>
    %103 = vector.extract_strided_slice %101 {offsets = [0, 32], sizes = [8, 32], strides = [1, 1]} : vector<8x128xf32> to vector<8x32xf32>
    %104 = vector.extract_strided_slice %101 {offsets = [0, 64], sizes = [8, 32], strides = [1, 1]} : vector<8x128xf32> to vector<8x32xf32>
    %105 = vector.extract_strided_slice %101 {offsets = [0, 96], sizes = [8, 32], strides = [1, 1]} : vector<8x128xf32> to vector<8x32xf32>
    %106 = arith.mulf %103, %81 : vector<8x32xf32>
    %107 = arith.mulf %102, %104 : vector<8x32xf32>
    %108 = arith.addf %106, %107 : vector<8x32xf32>
    %109 = math.tanh %108 : vector<8x32xf32>
    %110 = arith.mulf %105, %109 : vector<8x32xf32>
    %111 = arith.index_cast %87 : i32 to index
    %c0_32 = arith.constant 0 : index
    %112 = vector.load %arg11[%111, %c0_32] : memref<64x32xf32, #tpu.memory_space<vmem>>, vector<8x32xf32>
    tpu.vector_store %arg11[%111, %c0_32], %110 {strides = array<i32>} : memref<64x32xf32, #tpu.memory_space<vmem>>, vector<8x32xf32>,
    %c3_i32 = arith.constant 3 : i32
    %c8_i32_33 = arith.constant 8 : i32
    %113 = arith.muli %c3_i32, %c8_i32_33 : i32
    %114 = tpu.assume_multiple %113, 8 : i32
    %115 = arith.index_cast %114 : i32 to index
    %c0_34 = arith.constant 0 : index
    %116 = vector.load %arg10[%115, %c0_34] : memref<64x128xf32, #tpu.memory_space<vmem>>, vector<8x128xf32>
    %cst_35 = arith.constant dense<0.000000e+00> : vector<8x256xf32>
    %117 = tpu.matmul %110, %17, %cst_35 {dimension_numbers = #tpu.dot_dimension_numbers<[1], [0], [0], [1], [0, 0, 1, 1], [], []>} : vector<8x32xf32>, vector<32x256xf32>, vector<8x256xf32> -> vector<8x256xf32>
    %118 = vector.extract_strided_slice %117 {offsets = [0, 0], sizes = [8, 128], strides = [1, 1]} : vector<8x256xf32> to vector<8x128xf32>
    %119 = vector.extract_strided_slice %117 {offsets = [0, 128], sizes = [8, 128], strides = [1, 1]} : vector<8x256xf32> to vector<8x128xf32>
    %120 = arith.select %21, %118, %119 : vector<8x128xi1>, vector<8x128xf32>
    %121 = arith.addf %120, %116 : vector<8x128xf32>
    %122 = arith.mulf %121, %29 : vector<8x128xf32>
    %123 = math.tanh %122 : vector<8x128xf32>
    %cst_36 = arith.constant 5.000000e-01 : f32
    %124 = vector.broadcast %cst_36 : f32 to vector<8x128xf32>
    %125 = arith.mulf %124, %123 : vector<8x128xf32>
    %cst_37 = arith.constant 5.000000e-01 : f32
    %126 = vector.broadcast %cst_37 : f32 to vector<8x128xf32>
    %127 = arith.addf %125, %126 : vector<8x128xf32>
    %128 = arith.select %26, %123, %127 : vector<8x128xi1>, vector<8x128xf32>
    %129 = vector.extract_strided_slice %128 {offsets = [0, 0], sizes = [8, 32], strides = [1, 1]} : vector<8x128xf32> to vector<8x32xf32>
    %130 = vector.extract_strided_slice %128 {offsets = [0, 32], sizes = [8, 32], strides = [1, 1]} : vector<8x128xf32> to vector<8x32xf32>
    %131 = vector.extract_strided_slice %128 {offsets = [0, 64], sizes = [8, 32], strides = [1, 1]} : vector<8x128xf32> to vector<8x32xf32>
    %132 = vector.extract_strided_slice %128 {offsets = [0, 96], sizes = [8, 32], strides = [1, 1]} : vector<8x128xf32> to vector<8x32xf32>
    %133 = arith.mulf %130, %108 : vector<8x32xf32>
    %134 = arith.mulf %129, %131 : vector<8x32xf32>
    %135 = arith.addf %133, %134 : vector<8x32xf32>
    %136 = math.tanh %135 : vector<8x32xf32>
    %137 = arith.mulf %132, %136 : vector<8x32xf32>
    %138 = arith.index_cast %114 : i32 to index
    %c0_38 = arith.constant 0 : index
    %139 = vector.load %arg11[%138, %c0_38] : memref<64x32xf32, #tpu.memory_space<vmem>>, vector<8x32xf32>
    tpu.vector_store %arg11[%138, %c0_38], %137 {strides = array<i32>} : memref<64x32xf32, #tpu.memory_space<vmem>>, vector<8x32xf32>,
    %c4_i32_39 = arith.constant 4 : i32
    %c8_i32_40 = arith.constant 8 : i32
    %140 = arith.muli %c4_i32_39, %c8_i32_40 : i32
    %141 = tpu.assume_multiple %140, 8 : i32
    %142 = arith.index_cast %141 : i32 to index
    %c0_41 = arith.constant 0 : index
    %143 = vector.load %arg10[%142, %c0_41] : memref<64x128xf32, #tpu.memory_space<vmem>>, vector<8x128xf32>
    %cst_42 = arith.constant dense<0.000000e+00> : vector<8x256xf32>
    %144 = tpu.matmul %137, %17, %cst_42 {dimension_numbers = #tpu.dot_dimension_numbers<[1], [0], [0], [1], [0, 0, 1, 1], [], []>} : vector<8x32xf32>, vector<32x256xf32>, vector<8x256xf32> -> vector<8x256xf32>
    %145 = vector.extract_strided_slice %144 {offsets = [0, 0], sizes = [8, 128], strides = [1, 1]} : vector<8x256xf32> to vector<8x128xf32>
    %146 = vector.extract_strided_slice %144 {offsets = [0, 128], sizes = [8, 128], strides = [1, 1]} : vector<8x256xf32> to vector<8x128xf32>
    %147 = arith.select %21, %145, %146 : vector<8x128xi1>, vector<8x128xf32>
    %148 = arith.addf %147, %143 : vector<8x128xf32>
    %149 = arith.mulf %148, %29 : vector<8x128xf32>
    %150 = math.tanh %149 : vector<8x128xf32>
    %cst_43 = arith.constant 5.000000e-01 : f32
    %151 = vector.broadcast %cst_43 : f32 to vector<8x128xf32>
    %152 = arith.mulf %151, %150 : vector<8x128xf32>
    %cst_44 = arith.constant 5.000000e-01 : f32
    %153 = vector.broadcast %cst_44 : f32 to vector<8x128xf32>
    %154 = arith.addf %152, %153 : vector<8x128xf32>
    %155 = arith.select %26, %150, %154 : vector<8x128xi1>, vector<8x128xf32>
    %156 = vector.extract_strided_slice %155 {offsets = [0, 0], sizes = [8, 32], strides = [1, 1]} : vector<8x128xf32> to vector<8x32xf32>
    %157 = vector.extract_strided_slice %155 {offsets = [0, 32], sizes = [8, 32], strides = [1, 1]} : vector<8x128xf32> to vector<8x32xf32>
    %158 = vector.extract_strided_slice %155 {offsets = [0, 64], sizes = [8, 32], strides = [1, 1]} : vector<8x128xf32> to vector<8x32xf32>
    %159 = vector.extract_strided_slice %155 {offsets = [0, 96], sizes = [8, 32], strides = [1, 1]} : vector<8x128xf32> to vector<8x32xf32>
    %160 = arith.mulf %157, %135 : vector<8x32xf32>
    %161 = arith.mulf %156, %158 : vector<8x32xf32>
    %162 = arith.addf %160, %161 : vector<8x32xf32>
    %163 = math.tanh %162 : vector<8x32xf32>
    %164 = arith.mulf %159, %163 : vector<8x32xf32>
    %165 = arith.index_cast %141 : i32 to index
    %c0_45 = arith.constant 0 : index
    %166 = vector.load %arg11[%165, %c0_45] : memref<64x32xf32, #tpu.memory_space<vmem>>, vector<8x32xf32>
    tpu.vector_store %arg11[%165, %c0_45], %164 {strides = array<i32>} : memref<64x32xf32, #tpu.memory_space<vmem>>, vector<8x32xf32>,
    %c5_i32 = arith.constant 5 : i32
    %c8_i32_46 = arith.constant 8 : i32
    %167 = arith.muli %c5_i32, %c8_i32_46 : i32
    %168 = tpu.assume_multiple %167, 8 : i32
    %169 = arith.index_cast %168 : i32 to index
    %c0_47 = arith.constant 0 : index
    %170 = vector.load %arg10[%169, %c0_47] : memref<64x128xf32, #tpu.memory_space<vmem>>, vector<8x128xf32>
    %cst_48 = arith.constant dense<0.000000e+00> : vector<8x256xf32>
    %171 = tpu.matmul %164, %17, %cst_48 {dimension_numbers = #tpu.dot_dimension_numbers<[1], [0], [0], [1], [0, 0, 1, 1], [], []>} : vector<8x32xf32>, vector<32x256xf32>, vector<8x256xf32> -> vector<8x256xf32>
    %172 = vector.extract_strided_slice %171 {offsets = [0, 0], sizes = [8, 128], strides = [1, 1]} : vector<8x256xf32> to vector<8x128xf32>
    %173 = vector.extract_strided_slice %171 {offsets = [0, 128], sizes = [8, 128], strides = [1, 1]} : vector<8x256xf32> to vector<8x128xf32>
    %174 = arith.select %21, %172, %173 : vector<8x128xi1>, vector<8x128xf32>
    %175 = arith.addf %174, %170 : vector<8x128xf32>
    %176 = arith.mulf %175, %29 : vector<8x128xf32>
    %177 = math.tanh %176 : vector<8x128xf32>
    %cst_49 = arith.constant 5.000000e-01 : f32
    %178 = vector.broadcast %cst_49 : f32 to vector<8x128xf32>
    %179 = arith.mulf %178, %177 : vector<8x128xf32>
    %cst_50 = arith.constant 5.000000e-01 : f32
    %180 = vector.broadcast %cst_50 : f32 to vector<8x128xf32>
    %181 = arith.addf %179, %180 : vector<8x128xf32>
    %182 = arith.select %26, %177, %181 : vector<8x128xi1>, vector<8x128xf32>
    %183 = vector.extract_strided_slice %182 {offsets = [0, 0], sizes = [8, 32], strides = [1, 1]} : vector<8x128xf32> to vector<8x32xf32>
    %184 = vector.extract_strided_slice %182 {offsets = [0, 32], sizes = [8, 32], strides = [1, 1]} : vector<8x128xf32> to vector<8x32xf32>
    %185 = vector.extract_strided_slice %182 {offsets = [0, 64], sizes = [8, 32], strides = [1, 1]} : vector<8x128xf32> to vector<8x32xf32>
    %186 = vector.extract_strided_slice %182 {offsets = [0, 96], sizes = [8, 32], strides = [1, 1]} : vector<8x128xf32> to vector<8x32xf32>
    %187 = arith.mulf %184, %162 : vector<8x32xf32>
    %188 = arith.mulf %183, %185 : vector<8x32xf32>
    %189 = arith.addf %187, %188 : vector<8x32xf32>
    %190 = math.tanh %189 : vector<8x32xf32>
    %191 = arith.mulf %186, %190 : vector<8x32xf32>
    %192 = arith.index_cast %168 : i32 to index
    %c0_51 = arith.constant 0 : index
    %193 = vector.load %arg11[%192, %c0_51] : memref<64x32xf32, #tpu.memory_space<vmem>>, vector<8x32xf32>
    tpu.vector_store %arg11[%192, %c0_51], %191 {strides = array<i32>} : memref<64x32xf32, #tpu.memory_space<vmem>>, vector<8x32xf32>,
    %c6_i32 = arith.constant 6 : i32
    %c8_i32_52 = arith.constant 8 : i32
    %194 = arith.muli %c6_i32, %c8_i32_52 : i32
    %195 = tpu.assume_multiple %194, 8 : i32
    %196 = arith.index_cast %195 : i32 to index
    %c0_53 = arith.constant 0 : index
    %197 = vector.load %arg10[%196, %c0_53] : memref<64x128xf32, #tpu.memory_space<vmem>>, vector<8x128xf32>
    %cst_54 = arith.constant dense<0.000000e+00> : vector<8x256xf32>
    %198 = tpu.matmul %191, %17, %cst_54 {dimension_numbers = #tpu.dot_dimension_numbers<[1], [0], [0], [1], [0, 0, 1, 1], [], []>} : vector<8x32xf32>, vector<32x256xf32>, vector<8x256xf32> -> vector<8x256xf32>
    %199 = vector.extract_strided_slice %198 {offsets = [0, 0], sizes = [8, 128], strides = [1, 1]} : vector<8x256xf32> to vector<8x128xf32>
    %200 = vector.extract_strided_slice %198 {offsets = [0, 128], sizes = [8, 128], strides = [1, 1]} : vector<8x256xf32> to vector<8x128xf32>
    %201 = arith.select %21, %199, %200 : vector<8x128xi1>, vector<8x128xf32>
    %202 = arith.addf %201, %197 : vector<8x128xf32>
    %203 = arith.mulf %202, %29 : vector<8x128xf32>
    %204 = math.tanh %203 : vector<8x128xf32>
    %cst_55 = arith.constant 5.000000e-01 : f32
    %205 = vector.broadcast %cst_55 : f32 to vector<8x128xf32>
    %206 = arith.mulf %205, %204 : vector<8x128xf32>
    %cst_56 = arith.constant 5.000000e-01 : f32
    %207 = vector.broadcast %cst_56 : f32 to vector<8x128xf32>
    %208 = arith.addf %206, %207 : vector<8x128xf32>
    %209 = arith.select %26, %204, %208 : vector<8x128xi1>, vector<8x128xf32>
    %210 = vector.extract_strided_slice %209 {offsets = [0, 0], sizes = [8, 32], strides = [1, 1]} : vector<8x128xf32> to vector<8x32xf32>
    %211 = vector.extract_strided_slice %209 {offsets = [0, 32], sizes = [8, 32], strides = [1, 1]} : vector<8x128xf32> to vector<8x32xf32>
    %212 = vector.extract_strided_slice %209 {offsets = [0, 64], sizes = [8, 32], strides = [1, 1]} : vector<8x128xf32> to vector<8x32xf32>
    %213 = vector.extract_strided_slice %209 {offsets = [0, 96], sizes = [8, 32], strides = [1, 1]} : vector<8x128xf32> to vector<8x32xf32>
    %214 = arith.mulf %211, %189 : vector<8x32xf32>
    %215 = arith.mulf %210, %212 : vector<8x32xf32>
    %216 = arith.addf %214, %215 : vector<8x32xf32>
    %217 = math.tanh %216 : vector<8x32xf32>
    %218 = arith.mulf %213, %217 : vector<8x32xf32>
    %219 = arith.index_cast %195 : i32 to index
    %c0_57 = arith.constant 0 : index
    %220 = vector.load %arg11[%219, %c0_57] : memref<64x32xf32, #tpu.memory_space<vmem>>, vector<8x32xf32>
    tpu.vector_store %arg11[%219, %c0_57], %218 {strides = array<i32>} : memref<64x32xf32, #tpu.memory_space<vmem>>, vector<8x32xf32>,
    %c7_i32_58 = arith.constant 7 : i32
    %c8_i32_59 = arith.constant 8 : i32
    %221 = arith.muli %c7_i32_58, %c8_i32_59 : i32
    %222 = tpu.assume_multiple %221, 8 : i32
    %223 = arith.index_cast %222 : i32 to index
    %c0_60 = arith.constant 0 : index
    %224 = vector.load %arg10[%223, %c0_60] : memref<64x128xf32, #tpu.memory_space<vmem>>, vector<8x128xf32>
    %cst_61 = arith.constant dense<0.000000e+00> : vector<8x256xf32>
    %225 = tpu.matmul %218, %17, %cst_61 {dimension_numbers = #tpu.dot_dimension_numbers<[1], [0], [0], [1], [0, 0, 1, 1], [], []>} : vector<8x32xf32>, vector<32x256xf32>, vector<8x256xf32> -> vector<8x256xf32>
    %226 = vector.extract_strided_slice %225 {offsets = [0, 0], sizes = [8, 128], strides = [1, 1]} : vector<8x256xf32> to vector<8x128xf32>
    %227 = vector.extract_strided_slice %225 {offsets = [0, 128], sizes = [8, 128], strides = [1, 1]} : vector<8x256xf32> to vector<8x128xf32>
    %228 = arith.select %21, %226, %227 : vector<8x128xi1>, vector<8x128xf32>
    %229 = arith.addf %228, %224 : vector<8x128xf32>
    %230 = arith.mulf %229, %29 : vector<8x128xf32>
    %231 = math.tanh %230 : vector<8x128xf32>
    %cst_62 = arith.constant 5.000000e-01 : f32
    %232 = vector.broadcast %cst_62 : f32 to vector<8x128xf32>
    %233 = arith.mulf %232, %231 : vector<8x128xf32>
    %cst_63 = arith.constant 5.000000e-01 : f32
    %234 = vector.broadcast %cst_63 : f32 to vector<8x128xf32>
    %235 = arith.addf %233, %234 : vector<8x128xf32>
    %236 = arith.select %26, %231, %235 : vector<8x128xi1>, vector<8x128xf32>
    %237 = vector.extract_strided_slice %236 {offsets = [0, 0], sizes = [8, 32], strides = [1, 1]} : vector<8x128xf32> to vector<8x32xf32>
    %238 = vector.extract_strided_slice %236 {offsets = [0, 32], sizes = [8, 32], strides = [1, 1]} : vector<8x128xf32> to vector<8x32xf32>
    %239 = vector.extract_strided_slice %236 {offsets = [0, 64], sizes = [8, 32], strides = [1, 1]} : vector<8x128xf32> to vector<8x32xf32>
    %240 = vector.extract_strided_slice %236 {offsets = [0, 96], sizes = [8, 32], strides = [1, 1]} : vector<8x128xf32> to vector<8x32xf32>
    %241 = arith.mulf %238, %216 : vector<8x32xf32>
    %242 = arith.mulf %237, %239 : vector<8x32xf32>
    %243 = arith.addf %241, %242 : vector<8x32xf32>
    %244 = math.tanh %243 : vector<8x32xf32>
    %245 = arith.mulf %240, %244 : vector<8x32xf32>
    %246 = arith.index_cast %222 : i32 to index
    %c0_64 = arith.constant 0 : index
    %247 = vector.load %arg11[%246, %c0_64] : memref<64x32xf32, #tpu.memory_space<vmem>>, vector<8x32xf32>
    tpu.vector_store %arg11[%246, %c0_64], %245 {strides = array<i32>} : memref<64x32xf32, #tpu.memory_space<vmem>>, vector<8x32xf32>,
    %c8_i32_65 = arith.constant 8 : i32
    %c0_66 = arith.constant 0 : index
    %c0_67 = arith.constant 0 : index
    %248 = vector.load %arg11[%c0_66, %c0_67] : memref<64x32xf32, #tpu.memory_space<vmem>>, vector<64x32xf32>
    %249 = tpu.iota {dimensions = array<i32: 1>} : vector<8x64xi32>
    %250 = tpu.iota {dimensions = array<i32: 0>} : vector<8x64xi32>
    %c8_i32_68 = arith.constant 8 : i32
    %251 = vector.broadcast %c8_i32_68 : i32 to vector<8x64xi32>
    %252 = arith.muli %250, %251 : vector<8x64xi32>
    %c1_i32_69 = arith.constant 1 : i32
    %253 = vector.broadcast %c1_i32_69 : i32 to vector<8x64xi32>
    %254 = arith.addi %252, %253 : vector<8x64xi32>
    %255 = arith.cmpi eq, %249, %254 : vector<8x64xi32>
    %cst_70 = arith.constant 1.000000e+00 : f32
    %cst_71 = arith.constant 0.000000e+00 : f32
    %256 = vector.broadcast %cst_70 : f32 to vector<8x64xf32>
    %257 = vector.broadcast %cst_71 : f32 to vector<8x64xf32>
    %258 = arith.select %255, %256, %257 : vector<8x64xi1>, vector<8x64xf32>
    %cst_72 = arith.constant dense<0.000000e+00> : vector<8x32xf32>
    %259 = tpu.matmul %258, %248, %cst_72 {dimension_numbers = #tpu.dot_dimension_numbers<[1], [0], [0], [1], [0, 0, 1, 1], [], []>} : vector<8x64xf32>, vector<64x32xf32>, vector<8x32xf32> -> vector<8x32xf32>
    %c8_i32_73 = arith.constant 8 : i32
    %260 = vector.broadcast %c8_i32_73 : i32 to vector<8x64xi32>
    %261 = arith.muli %250, %260 : vector<8x64xi32>
    %c3_i32_74 = arith.constant 3 : i32
    %262 = vector.broadcast %c3_i32_74 : i32 to vector<8x64xi32>
    %263 = arith.addi %261, %262 : vector<8x64xi32>
    %264 = arith.cmpi eq, %249, %263 : vector<8x64xi32>
    %cst_75 = arith.constant 1.000000e+00 : f32
    %cst_76 = arith.constant 0.000000e+00 : f32
    %265 = vector.broadcast %cst_75 : f32 to vector<8x64xf32>
    %266 = vector.broadcast %cst_76 : f32 to vector<8x64xf32>
    %267 = arith.select %264, %265, %266 : vector<8x64xi1>, vector<8x64xf32>
    %cst_77 = arith.constant dense<0.000000e+00> : vector<8x32xf32>
    %268 = tpu.matmul %267, %248, %cst_77 {dimension_numbers = #tpu.dot_dimension_numbers<[1], [0], [0], [1], [0, 0, 1, 1], [], []>} : vector<8x64xf32>, vector<64x32xf32>, vector<8x32xf32> -> vector<8x32xf32>
    %c7_i32_78 = arith.constant 7 : i32
    %269 = vector.broadcast %c7_i32_78 : i32 to vector<8x64xi32>
    %270 = arith.subi %269, %250 : vector<8x64xi32>
    %c8_i32_79 = arith.constant 8 : i32
    %271 = vector.broadcast %c8_i32_79 : i32 to vector<8x64xi32>
    %272 = arith.muli %270, %271 : vector<8x64xi32>
    %c5_i32_80 = arith.constant 5 : i32
    %273 = vector.broadcast %c5_i32_80 : i32 to vector<8x64xi32>
    %274 = arith.addi %272, %273 : vector<8x64xi32>
    %275 = arith.cmpi eq, %249, %274 : vector<8x64xi32>
    %cst_81 = arith.constant 1.000000e+00 : f32
    %cst_82 = arith.constant 0.000000e+00 : f32
    %276 = vector.broadcast %cst_81 : f32 to vector<8x64xf32>
    %277 = vector.broadcast %cst_82 : f32 to vector<8x64xf32>
    %278 = arith.select %275, %276, %277 : vector<8x64xi1>, vector<8x64xf32>
    %cst_83 = arith.constant dense<0.000000e+00> : vector<8x32xf32>
    %279 = tpu.matmul %278, %248, %cst_83 {dimension_numbers = #tpu.dot_dimension_numbers<[1], [0], [0], [1], [0, 0, 1, 1], [], []>} : vector<8x64xf32>, vector<64x32xf32>, vector<8x32xf32> -> vector<8x32xf32>
    %c7_i32_84 = arith.constant 7 : i32
    %280 = vector.broadcast %c7_i32_84 : i32 to vector<8x64xi32>
    %281 = arith.subi %280, %250 : vector<8x64xi32>
    %c8_i32_85 = arith.constant 8 : i32
    %282 = vector.broadcast %c8_i32_85 : i32 to vector<8x64xi32>
    %283 = arith.muli %281, %282 : vector<8x64xi32>
    %c7_i32_86 = arith.constant 7 : i32
    %284 = vector.broadcast %c7_i32_86 : i32 to vector<8x64xi32>
    %285 = arith.addi %283, %284 : vector<8x64xi32>
    %286 = arith.cmpi eq, %249, %285 : vector<8x64xi32>
    %cst_87 = arith.constant 1.000000e+00 : f32
    %cst_88 = arith.constant 0.000000e+00 : f32
    %287 = vector.broadcast %cst_87 : f32 to vector<8x64xf32>
    %288 = vector.broadcast %cst_88 : f32 to vector<8x64xf32>
    %289 = arith.select %286, %287, %288 : vector<8x64xi1>, vector<8x64xf32>
    %cst_89 = arith.constant dense<0.000000e+00> : vector<8x32xf32>
    %290 = tpu.matmul %289, %248, %cst_89 {dimension_numbers = #tpu.dot_dimension_numbers<[1], [0], [0], [1], [0, 0, 1, 1], [], []>} : vector<8x64xf32>, vector<64x32xf32>, vector<8x32xf32> -> vector<8x32xf32>
    %291 = tpu.concatenate %259, %268, %279, %290 in 1 : vector<8x32xf32>, vector<8x32xf32>, vector<8x32xf32>, vector<8x32xf32> -> vector<8x128xf32>
    %c0_90 = arith.constant 0 : index
    %c0_91 = arith.constant 0 : index
    %292 = vector.load %arg5[%c0_90, %c0_91] : memref<128x128xf32, #tpu.memory_space<vmem>>, vector<128x128xf32>
    %cst_92 = arith.constant dense<0.000000e+00> : vector<8x128xf32>
    %293 = tpu.matmul %291, %292, %cst_92 {dimension_numbers = #tpu.dot_dimension_numbers<[1], [0], [0], [1], [0, 0, 1, 1], [], []>} : vector<8x128xf32>, vector<128x128xf32>, vector<8x128xf32> -> vector<8x128xf32>
    %c0_93 = arith.constant 0 : index
    %c0_94 = arith.constant 0 : index
    %294 = vector.load %arg6[%c0_93, %c0_94] : memref<1x128xf32, #tpu.memory_space<vmem>>, vector<1x128xf32>
    %295 = vector.broadcast %294 : vector<1x128xf32> to vector<8x128xf32>
    %296 = arith.addf %293, %295 : vector<8x128xf32>
    %cst_95 = arith.constant dense<0.000000e+00> : vector<128xf32>
    %297 = vector.multi_reduction <add>, %296, %cst_95 [0] : vector<8x128xf32> to vector<128xf32>
    %298 = vector.shape_cast %297 : vector<128xf32> to vector<1x128xf32>
    %cst_96 = arith.constant 8.000000e+00 : f32
    %299 = vector.broadcast %cst_96 : f32 to vector<1x128xf32>
    %300 = arith.divf %298, %299 : vector<1x128xf32>
    %301 = vector.broadcast %300 : vector<1x128xf32> to vector<8x128xf32>
    %302 = arith.subf %296, %301 : vector<8x128xf32>
    %303 = vector.broadcast %300 : vector<1x128xf32> to vector<8x128xf32>
    %304 = arith.subf %296, %303 : vector<8x128xf32>
    %305 = arith.mulf %302, %304 : vector<8x128xf32>
    %cst_97 = arith.constant dense<0.000000e+00> : vector<128xf32>
    %306 = vector.multi_reduction <add>, %305, %cst_97 [0] : vector<8x128xf32> to vector<128xf32>
    %307 = vector.shape_cast %306 : vector<128xf32> to vector<1x128xf32>
    %cst_98 = arith.constant 8.000000e+00 : f32
    %308 = vector.broadcast %cst_98 : f32 to vector<1x128xf32>
    %309 = arith.divf %307, %308 : vector<1x128xf32>
    %310 = vector.broadcast %300 : vector<1x128xf32> to vector<8x128xf32>
    %311 = arith.subf %296, %310 : vector<8x128xf32>
    %cst_99 = arith.constant 9.99999974E-6 : f32
    %312 = vector.broadcast %cst_99 : f32 to vector<1x128xf32>
    %313 = arith.addf %309, %312 : vector<1x128xf32>
    %314 = math.rsqrt %313 : vector<1x128xf32>
    %315 = vector.broadcast %314 : vector<1x128xf32> to vector<8x128xf32>
    %316 = arith.mulf %311, %315 : vector<8x128xf32>
    %cst_100 = arith.constant 0.000000e+00 : f32
    %317 = vector.broadcast %cst_100 : f32 to vector<8x128xf32>
    %318 = arith.maximumf %316, %317 : vector<8x128xf32>
    %c0_101 = arith.constant 0 : index
    %c0_102 = arith.constant 0 : index
    %319 = vector.load %arg7[%c0_101, %c0_102] : memref<128x3xf32, #tpu.memory_space<vmem>>, vector<128x3xf32>
    %cst_103 = arith.constant dense<0.000000e+00> : vector<8x3xf32>
    %320 = tpu.matmul %318, %319, %cst_103 {dimension_numbers = #tpu.dot_dimension_numbers<[1], [0], [0], [1], [0, 0, 1, 1], [], []>} : vector<8x128xf32>, vector<128x3xf32>, vector<8x3xf32> -> vector<8x3xf32>
    %c0_104 = arith.constant 0 : index
    %c0_105 = arith.constant 0 : index
    %321 = vector.load %arg8[%c0_104, %c0_105] : memref<1x3xf32, #tpu.memory_space<vmem>>, vector<1x3xf32>
    %322 = vector.broadcast %321 : vector<1x3xf32> to vector<8x3xf32>
    %323 = arith.addf %320, %322 : vector<8x3xf32>
    %c0_106 = arith.constant 0 : index
    %c0_107 = arith.constant 0 : index
    %324 = vector.load %arg9[%c0_106, %c0_107] : memref<8x3xf32, #tpu.memory_space<vmem>>, vector<8x3xf32>
    tpu.vector_store %arg9[%c0_106, %c0_107], %323 {strides = array<i32>} : memref<8x3xf32, #tpu.memory_space<vmem>>, vector<8x3xf32>,
    return
  }
}

</mosaic_0001>

<bundles_post_ra>
// kernel: siamese_nli_forward.1
= control target key start
LH: loop header
LB: loop body
LE: loop exit
PB: predicated region body
PF: predicated region fallthrough
CT: control target
= control target key end

     0   :  { %14 = vsyncpa [#allocation5], 0  ;;  %s2716_s0 = inlined_call_operand.vmem [shape: f32[64,128], index: 0, kind: input, shape index: {}]   ;;  %s2717_s1 = inlined_call_operand.vmem [shape: f32[128,128], index: 1, kind: input, shape index: {}]   ;;  %s2718_s2 = inlined_call_operand.vmem [shape: f32[1,128], index: 2, kind: input, shape index: {}]   ;;  %s2719_s3 = inlined_call_operand.vmem [shape: f32[1,128], index: 3, kind: input, shape index: {}]   ;;  %s2720_s4 = inlined_call_operand.hbm [shape: f32[32,256], index: 4, kind: input, shape index: {}]   ;;  %s2721_s5 = inlined_call_operand.vmem [shape: f32[128,128], index: 5, kind: input, shape index: {}]   ;;  %s2722_s6 = inlined_call_operand.vmem [shape: f32[1,128], index: 6, kind: input, shape index: {}]   ;;  %s2723_s7 = inlined_call_operand.hbm [shape: f32[128,3], index: 7, kind: input, shape index: {}]   ;;  %s2724_s8 = inlined_call_operand.vmem [shape: f32[1,3], index: 8, kind: input, shape index: {}]   ;;  %s2725_s9 = inlined_call_operand.vmem [shape: f32[8,3], index: 9, kind: output, shape index: {}]  }
   0x1   :  { %15 = vsyncpa [#allocation7], 0  ;;  %s2232_s30 = smov [#allocation4]   ;;  %s2184_s13 = scalar_lea.hbm %s2720_s4, 1024 }
   0x2   :  { %s29_s10 = sshll.u32 %s2232_s30, 4  ;;  %p2185_p0 = scmp.ne.s32.totalorder %s2720_s4, %s2184_s13  ;;  %s30_s10 = int_to_ptr.vmem [resolvable:$true] %s29_s10 }
   0x3   :  { %p2188_p1 = scmp.lt.u32.totalorder %s2184_s13, %s2720_s4 }
   0x5   :  { %p2190_p2 = pnand %p2188_p1, %p2185_p0 }
   0x7   :  { %2193 = shalt.err (!%p2190_p2)
}
   0x8   :  { %s2194_s18 = scalar_lea.vmem %s30_s10, 1024  ;;  %p2199_p4 = scmp.lt.s32.totalorder %s30_s10, %s30_s10 }
   0x9   :  { %p2195_p3 = scmp.ne.s32.totalorder %s30_s10, %s2194_s18  ;;  %p2200_p5 = scmp.lt.s32.totalorder %s2194_s18, %s2194_s18 }
   0xb   :  { %p2201_p6 = por %p2200_p5, %p2199_p4 }
   0xd   :  { %p2202_p7 = pnand %p2201_p6, %p2195_p3 }
   0xf   :  { %2205 = shalt.err (!%p2202_p7)
}
  0x10   :  { %s2233_s19 = smov 256   ;;  %s2234_s20 = smov 16  }
  0x11   :  { %35 = dma.hbm_to_vmem [thread:$0]  %s2720_s4, 1024, %s30_s10, [#allocation5], %s2233_s19, %s2233_s19, %s2234_s20  }
  0x12   :  { %s2235_s23 = smov [#allocation6]   ;;  %s2206_s27 = scalar_lea.hbm %s2723_s7, 2048 }
  0x13   :  { %s45_s24 = sshll.u32 %s2235_s23, 4  ;;  %p2207_p8 = scmp.ne.s32.totalorder %s2723_s7, %s2206_s27  ;;  %s46_s24 = int_to_ptr.vmem [resolvable:$true] %s45_s24 }
  0x14   :  { %p2210_p9 = scmp.lt.u32.totalorder %s2206_s27, %s2723_s7 }
  0x16   :  { %p2212_p10 = pnand %p2210_p9, %p2207_p8 }
  0x18   :  { %2215 = shalt.err (!%p2212_p10)
}
  0x19   :  { %s2216_s12 = scalar_lea.vmem %s46_s24, 2048  ;;  %p2221_p12 = scmp.lt.s32.totalorder %s46_s24, %s46_s24 }
  0x1a   :  { %p2217_p11 = scmp.ne.s32.totalorder %s46_s24, %s2216_s12  ;;  %p2222_p13 = scmp.lt.s32.totalorder %s2216_s12, %s2216_s12 }
  0x1c   :  { %p2223_p0 = por %p2222_p13, %p2221_p12 }
  0x1e   :  { %p2224_p1 = pnand %p2223_p0, %p2217_p11 }
  0x20   :  { %2227 = shalt.err (!%p2224_p1)
}
  0x21   :  { %s2236_s4 = smov 128   ;;  %s2237_s10 = smov 8  }
  0x22   :  { %51 = dma.hbm_to_vmem [thread:$0]  %s2723_s7, 2048, %s46_s24, [#allocation7], %s2236_s4, %s2236_s4, %s2237_s10  }
  0x23   :  { %2228 = dma.done.wait [#allocation5], 1024  }
  0x24   :  { %2229 = vsyncadd [#allocation5], 4294966272 }
  0x25   :  { %2230 = dma.done.wait [#allocation7], 2048  }
  0x26   :  { %2231 = vsyncadd [#allocation7], 4294965248  ;;  %v2238_v0 = vmov 0.0   ;;  %v115_v1 = vld [vmem:[%s2717_s1] sm:$0xff]  ;;  %v116_v2 = vld [vmem:[%s2717_s1 + $0x8] sm:$0xff]  ;;  %v60_v39 = vlaneseq  ;;  %v2239_v53 = vmov 0.5  }
  0x27   :  { %328 = vmatprep.mubr.f32.mxu1 %v2238_v0  ;;  %v117_v3 = vld [vmem:[%s2717_s1 + $0x10] sm:$0xff]  ;;  %v1945_v4 = vpack.c.bf16 %v116_v2, %v115_v1  ;;  %v118_v5 = vld [vmem:[%s2717_s1 + $0x18] sm:$0xff]  ;;  %v119_v7 = vld [vmem:[%s2717_s1 + $0x20] sm:$0xff]  ;;  %vm260_vm5 = vcmask 261120   ;;  %vm2243_vm13 = vmmov 0   ;;  %s2244_s25 = smov 96  }
  0x28   :  { %v1949_v6 = vpack.c.bf16 %v118_v5, %v117_v3  ;;  %v120_v8 = vld [vmem:[%s2717_s1 + $0x28] sm:$0xff]  ;;  %v247_v11 = vld [vmem:[#allocation4 + $0x18] sm:$0xff]  ;;  %v244_v12 = vld [vmem:[#allocation4] sm:$0xff]  ;;  %v2398_v40 = vshrl.u32 %v60_v39, 7  ;;  %v2404_v45 = vand.u32 127, %v60_v39 }
  0x29   :  { %1946 = vmatprep.subr.bf16.mxu0 %v1945_v4  ;;  %v245_v9 = vld [vmem:[#allocation4 + $0x8] sm:$0xff]  ;;  %v1953_v10 = vpack.c.bf16 %v120_v8, %v119_v7  ;;  %v246_v13 = vld [vmem:[#allocation4 + $0x10] sm:$0xff]  ;;  %v122_v15 = vld [vmem:[%s2717_s1 + $0x38] sm:$0xff] }
  0x2a   :  { %1948 = vmatpush3.bf16.msra.mxu0 %v1945_v4  ;;  %v121_v14 = vld [vmem:[%s2717_s1 + $0x30] sm:$0xff]  ;;  %v2344_v16 = vpack.c.bf16 %v247_v11, %v245_v9  ;;  %v2346_v17 = vpack.c.bf16 %v246_v13, %v244_v12  ;;  %v249_v18 = vld [vmem:[#allocation4 + $0x28] sm:$0xff]  ;;  %v251_v19 = vld [vmem:[#allocation4 + $0x38] sm:$0xff]  ;;  %vm254_vm0 = vcmp.lt.s32.totalorder %v2398_v40, 4  ;;  %v69_v44 = vand.u32 7, %v2398_v40 }
  0x2b   :  { %1950 = vmatprep.subr.bf16.mxu0 %v1949_v6  ;;  %v248_v20 = vld [vmem:[#allocation4 + $0x20] sm:$0xff]  ;;  %v250_v21 = vld [vmem:[#allocation4 + $0x30] sm:$0xff]  ;;  %v2349_v22 = vpack.c.bf16 %v251_v19, %v249_v18  ;;  %v1957_v24 = vpack.c.bf16 %v122_v15, %v121_v14  ;;  %v124_v27 = vld [vmem:[%s2717_s1 + $0x48] sm:$0xff]  ;;  %vm255_vm2 = vcmp.ge.s32.totalorder %v2404_v45, 64  ;;  %vm256_vm3 = vcmp.lt.s32.totalorder %v2404_v45, 96 }
  0x2c   :  { %1978 = vmatprep.subr.bf16.mxu1 %v2344_v16  ;;  %v107_v23 = vld [vmem:[%s2716_s0] sm:$0xff]  ;;  %v2355_v25 = vpack.c.bf16 %v250_v21, %v248_v20  ;;  %v125_v29 = vld [vmem:[%s2717_s1 + $0x50] sm:$0xff]  ;;  %v126_v30 = vld [vmem:[%s2717_s1 + $0x58] sm:$0xff]  ;;  %vm77_vm1 = vcmp.lt.s32.totalorder %v69_v44, 4  ;;  %v62_v7 = vadd.s32 8, %v2398_v40 }
  0x2d   :  { %1980 = vmatpush1.bf16.msra.mxu1 %v2346_v17  ;;  %v123_v26 = vld [vmem:[%s2717_s1 + $0x40] sm:$0xff]  ;;  %1787 = vmatprep.mubr.f32.mxu0 %v107_v23  ;;  %v1965_v31 = vpack.c.bf16 %v126_v30, %v125_v29  ;;  %v128_v33 = vld [vmem:[%s2717_s1 + $0x68] sm:$0xff]  ;;  %v129_v35 = vld [vmem:[%s2717_s1 + $0x70] sm:$0xff] }
  0x2e   :  { %1952 = vmatpush3.bf16.msra.mxu0 %v1949_v6  ;;  %1982 = vmatprep.subr.bf16.mxu1 %v2349_v22  ;;  %v1961_v28 = vpack.c.bf16 %v124_v27, %v123_v26  ;;  %v127_v32 = vld [vmem:[%s2717_s1 + $0x60] sm:$0xff]  ;;  %v130_v36 = vld [vmem:[%s2717_s1 + $0x78] sm:$0xff]  ;;  %v108_v38 = vld [vmem:[%s2716_s0 + $0x8] sm:$0xff]  ;;  %v70_v8 = vand.u32 7, %v62_v7 }
  0x2f   :  { %1954 = vmatprep.subr.bf16.mxu0 %v1953_v10  ;;  %v1969_v34 = vpack.c.bf16 %v128_v33, %v127_v32  ;;  %v1973_v37 = vpack.c.bf16 %v130_v36, %v129_v35  ;;  %v2409_v46 = vld [vmem:[%s2718_s2] ss:$0 sm:$0xff]  ;;  %vm2420_vm4 = vmand %vm255_vm2, %vm256_vm3  ;;  %s2240_s2 = smov 64   ;;  %v109_v29 = vld [vmem:[%s2716_s0 + $0x10] sm:$0xff]  ;;  %vm1429_vm3 = vcmask 785408  }
  0x30   :  { %v2414_v47 = vld [vmem:[%s2719_s3] ss:$0 sm:$0xff]  ;;  %v2426_v54 = vsel %vm2420_vm4, 1.0, %v2239_v53  ;;  %s2241_s3 = smov 32   ;;  %vm78_vm6 = vcmp.lt.s32.totalorder %v70_v8, 4  ;;  %v110_v30 = vld [vmem:[%s2716_s0 + $0x18] sm:$0xff] }
  0x31   :  { %1984 = vmatpush1.bf16.msra.mxu1 %v2355_v25  ;;  %v99_v48 = vsel %vm77_vm1, %v2409_v46, %v2414_v47  ;;  %v100_v9 = vsel %vm78_vm6, %v2409_v46, %v2414_v47 }
  0x32   :  { %1956 = vmatpush3.bf16.msra.mxu0 %v1953_v10  ;;  %1986 = vmatprep.subr.bf16.mxu1 %v2344_v16 }
  0x33   :  { %1958 = vmatprep.subr.bf16.mxu0 %v1957_v24 }
  0x34   :  { %329 = vmatmul.mubr.f32.vlgmr.msra.gmra.mrb[0].mxu1 %v2238_v0 }
  0x35   :  { %1988 = vmatpush1.bf16.msra.mxu1 %v2346_v17  ;;  %432 = vmatprep.mubr.f32.mxu1 %v2238_v0 }
  0x36   :  { %1960 = vmatpush3.bf16.msra.mxu0 %v1957_v24  ;;  %1990 = vmatprep.subr.bf16.mxu1 %v2349_v22 }
  0x37   :  { %1962 = vmatprep.subr.bf16.mxu0 %v1961_v28 }
  0x39   :  { %1992 = vmatpush1.bf16.msra.mxu1 %v2355_v25 }
  0x3a   :  { %1964 = vmatpush3.bf16.msra.mxu0 %v1961_v28  ;;  %1994 = vmatprep.subr.bf16.mxu1 %v2344_v16 }
  0x3b   :  { %1966 = vmatprep.subr.bf16.mxu0 %v1965_v31 }
  0x3e   :  { %1968 = vmatpush3.bf16.msra.mxu0 %v1965_v31 }
  0x3f   :  { %1970 = vmatprep.subr.bf16.mxu0 %v1969_v34 }
  0x42   :  { %1972 = vmatpush3.bf16.msra.mxu0 %v1969_v34 }
  0x43   :  { %1974 = vmatprep.subr.bf16.mxu0 %v1973_v37 }
  0x46   :  { %1976 = vmatpush3.bf16.msra.mxu0 %v1973_v37  ;;  %v63_v37 = vadd.s32 16, %v2398_v40 }
  0x47   :  { %2018 = vmatprep.subr.bf16.mxu0 %v2344_v16 }
  0x49   :  { %1788 = vmatmul.mubr.f32.vlgmr.msra.gmra.mrb[0].mxu0 %v108_v38  ;;  %v71_v38 = vand.u32 7, %v63_v37 }
  0x4a   :  { %2020 = vmatpush1.bf16.msra.mxu0 %v2346_v17  ;;  %1790 = vmatprep.mubr.f32.mxu0 %v109_v29 }
  0x4b   :  { %2022 = vmatprep.subr.bf16.mxu0 %v2349_v22  ;;  %vm79_vm7 = vcmp.lt.s32.totalorder %v71_v38, 4 }
  0x4c   :  { %v101_v39 = vsel %vm79_vm7, %v2409_v46, %v2414_v47 }
  0x4d   :  { %1791 = vmatmul.mubr.f32.gmra.mrb[2].mxu0 %v110_v30 }
  0x4e   :  { %2024 = vmatpush1.bf16.msra.mxu0 %v2355_v25 }
  0x4f   :  { %2034 = vmatprep.subr.bf16.mxu0 %v2344_v16 }
 0x107   :  { %v330_v41 = vpop.f32.mrb[0].mxu1 }
 0x108   :  { %v332_v42 = vpop.f32.mrb[1].mxu1 }
 0x109   :  { %v335_v43 = vsel %vm254_vm0, %v330_v41, %v332_v42 }
 0x11c   :  { %v1789_v49 = vpop.f32.mrb[0].mxu0 }
 0x11d   :  { %v197_v51 = vpop.f32.mrb[1].mxu0  ;;  %v203_v11 = vadd.f32 %v1789_v49, %v100_v9 }
 0x11e   :  { %v198_v52 = vadd.f32 %v197_v51, %v99_v48 }
 0x120   :  { %v336_v55 = vadd.f32 %v335_v43, %v198_v52  ;;  %v1792_v34 = vpop.f32.mrb[2].mxu0 }
 0x121   :  { %v207_v35 = vpop.f32.mrb[3].mxu0 }
 0x122   :  { %v337_v56 = vmul.f32 %v336_v55, %v2426_v54  ;;  %v208_v41 = vadd.f32 %v207_v35, %v101_v39 }
 0x124   :  { %2150 = vtanh.f32 %v337_v56 }
 0x12e   :  { %v2151_v57 = vpop.eup %2150 }
 0x12f   :  { %v339_v58 = vmul.f32 0.5, %v2151_v57 }
 0x131   :  { %v340_v59 = vadd.f32 0.5, %v339_v58 }
 0x133   :  { %v341_v60 = vsel %vm2420_vm4, %v2151_v57, %v340_v59 }
 0x134   :  { %344 = vrot.lane.b32.xlu0 %v341_v60, %s2240_s2  ;;  %v342_v63 = vmul.f32 0.0, %v341_v60 }
 0x1a6   :  { %v345_v61 = vpop.permute.xlu0 %344 }
 0x1a7   :  { %v347_v62 = vmul.f32 %v345_v61, %v341_v60 }
 0x1a9   :  { %349 = vrot.lane.b32.xlu0 %v347_v62, %s2241_s3 }
 0x21b   :  { %v350_v1 = vpop.permute.xlu0 %349 }
 0x21c   :  { %v352_v2 = vadd.f32 %v350_v1, %v342_v63 }
 0x21e   :  { %2152 = vtanh.f32 %v352_v2 }
 0x228   :  { %v2153_v3 = vpop.eup %2152 }
 0x229   :  { %355 = vrot.lane.b32.xlu1 %v2153_v3, %s2240_s2 }
 0x29b   :  { %v356_v4 = vpop.permute.xlu1 %355 }
 0x29c   :  { %v358_v5 = vmul.f32 %v356_v4, %v341_v60 }
 0x29e   :  { %360 = vrot.lane.b32.xlu1 %v358_v5, %s2241_s3 }
 0x310   :  { %v361_v6 = vpop.permute.xlu1 %360 }
 0x311   :  { %363 = vst.msk [vmem:[#allocation3] sm:$0xff] %vm260_vm5, %v361_v6  ;;  %1648 = vmatmul.mubr.msk.f32.vlgmr.msra.gmra.mrb[2].mxu1 %vm260_vm5, %v361_v6 }
 0x312   :  { %1996 = vmatpush1.bf16.msra.mxu1 %v2346_v17  ;;  %537 = vmatprep.mubr.f32.mxu1 %v2238_v0 }
 0x313   :  { %1998 = vmatprep.subr.bf16.mxu1 %v2349_v22 }
 0x316   :  { %2000 = vmatpush1.bf16.msra.mxu1 %v2355_v25 }
 0x317   :  { %2002 = vmatprep.subr.bf16.mxu1 %v2344_v16 }
 0x3e4   :  { %v434_v10 = vpop.f32.mrb[2].mxu1 }
 0x3e5   :  { %v436_v12 = vpop.f32.mrb[3].mxu1 }
 0x3e6   :  { %v439_v13 = vsel %vm254_vm0, %v434_v10, %v436_v12 }
 0x3e7   :  { %v440_v14 = vadd.f32 %v439_v13, %v203_v11 }
 0x3e9   :  { %v441_v15 = vmul.f32 %v440_v14, %v2426_v54 }
 0x3eb   :  { %2154 = vtanh.f32 %v441_v15 }
 0x3f5   :  { %v2155_v18 = vpop.eup %2154 }
 0x3f6   :  { %v443_v19 = vmul.f32 0.5, %v2155_v18 }
 0x3f8   :  { %v444_v20 = vadd.f32 0.5, %v443_v19 }
 0x3fa   :  { %v445_v21 = vsel %vm2420_vm4, %v2155_v18, %v444_v20 }
 0x3fb   :  { %448 = vrot.lane.b32.xlu0 %v445_v21, %s2240_s2  ;;  %v446_v26 = vmul.f32 %v445_v21, %v352_v2  ;;  %v64_v2 = vadd.s32 24, %v2398_v40 }
 0x3fd   :  { %v72_v3 = vand.u32 7, %v64_v2 }
 0x3ff   :  { %vm80_vm8 = vcmp.lt.s32.totalorder %v72_v3, 4 }
 0x400   :  { %v102_v4 = vsel %vm80_vm8, %v2409_v46, %v2414_v47 }
 0x401   :  { %v213_v6 = vadd.f32 %v1792_v34, %v102_v4 }
 0x46d   :  { %v449_v23 = vpop.permute.xlu0 %448 }
 0x46e   :  { %v451_v24 = vmul.f32 %v449_v23, %v445_v21  ;;  %v112_v23 = vld [vmem:[%s2716_s0 + $0x28] sm:$0xff] }
 0x470   :  { %453 = vrot.lane.b32.xlu1 %v451_v24, %s2241_s3 }
 0x4e2   :  { %v454_v27 = vpop.permute.xlu1 %453 }
 0x4e3   :  { %v456_v28 = vadd.f32 %v454_v27, %v446_v26 }
 0x4e5   :  { %2156 = vtanh.f32 %v456_v28 }
 0x4ef   :  { %v2157_v31 = vpop.eup %2156 }
 0x4f0   :  { %459 = vrot.lane.b32.xlu0 %v2157_v31, %s2240_s2  ;;  %v65_v31 = vadd.s32 32, %v2398_v40 }
 0x562   :  { %v460_v32 = vpop.permute.xlu0 %459 }
 0x563   :  { %v462_v33 = vmul.f32 %v460_v32, %v445_v21  ;;  %v111_v21 = vld [vmem:[%s2716_s0 + $0x20] sm:$0xff]  ;;  %v73_v32 = vand.u32 7, %v65_v31 }
 0x564   :  { %1793 = vmatprep.mubr.f32.mxu0 %v111_v21  ;;  %v1099_v21 = vld [vmem:[#allocation3] sm:$0xff] }
 0x565   :  { %464 = vrot.lane.b32.xlu1 %v462_v33, %s2241_s3  ;;  %1794 = vmatmul.mubr.f32.gmra.mrb[4].mxu0 %v112_v23  ;;  %vm81_vm9 = vcmp.lt.s32.totalorder %v73_v32, 4  ;;  %v67_v32 = vadd.s32 48, %v2398_v40 }
 0x566   :  { %v103_v33 = vsel %vm81_vm9, %v2409_v46, %v2414_v47 }
 0x5d7   :  { %v465_v36 = vpop.permute.xlu1 %464 }
 0x5d8   :  { %468 = vst.msk [vmem:[#allocation3 + $0x8] sm:$0xff] %vm260_vm5, %v465_v36  ;;  %1649 = vmatmul.mubr.msk.f32.vlgmr.msra.gmra.mrb[4].mxu1 %vm260_vm5, %v465_v36 }
 0x5d9   :  { %2004 = vmatpush1.bf16.msra.mxu1 %v2346_v17  ;;  %642 = vmatprep.mubr.f32.mxu1 %v2238_v0 }
 0x5da   :  { %2006 = vmatprep.subr.bf16.mxu1 %v2349_v22 }
 0x5dd   :  { %2008 = vmatpush1.bf16.msra.mxu1 %v2355_v25 }
 0x5de   :  { %2010 = vmatprep.subr.bf16.mxu1 %v2344_v16 }
 0x6ab   :  { %v539_v42 = vpop.f32.mrb[4].mxu1 }
 0x6ac   :  { %v541_v43 = vpop.f32.mrb[5].mxu1 }
 0x6ad   :  { %v544_v44 = vsel %vm254_vm0, %v539_v42, %v541_v43 }
 0x6ae   :  { %v545_v48 = vadd.f32 %v544_v44, %v208_v41 }
 0x6b0   :  { %v546_v49 = vmul.f32 %v545_v48, %v2426_v54 }
 0x6b2   :  { %2158 = vtanh.f32 %v546_v49 }
 0x6bc   :  { %v2159_v51 = vpop.eup %2158 }
 0x6bd   :  { %v548_v52 = vmul.f32 0.5, %v2159_v51 }
 0x6bf   :  { %v549_v53 = vadd.f32 0.5, %v548_v52 }
 0x6c1   :  { %v550_v55 = vsel %vm2420_vm4, %v2159_v51, %v549_v53 }
 0x6c2   :  { %553 = vrot.lane.b32.xlu0 %v550_v55, %s2240_s2  ;;  %v551_v58 = vmul.f32 %v550_v55, %v456_v28  ;;  %v1795_v28 = vpop.f32.mrb[4].mxu0 }
 0x6c3   :  { %v217_v29 = vpop.f32.mrb[5].mxu0 }
 0x6c4   :  { %v218_v34 = vadd.f32 %v217_v29, %v103_v33  ;;  %v75_v33 = vand.u32 7, %v67_v32  ;;  %v1434_v32 = vld [vmem:[%s2721_s5 + $0x18] sm:$0xff] }
 0x6c6   :  { %vm83_vm11 = vcmp.lt.s32.totalorder %v75_v33, 4 }
 0x734   :  { %v554_v56 = vpop.permute.xlu0 %553 }
 0x735   :  { %v556_v57 = vmul.f32 %v554_v56, %v550_v55  ;;  %v114_v56 = vld [vmem:[%s2716_s0 + $0x38] sm:$0xff] }
 0x737   :  { %558 = vrot.lane.b32.xlu1 %v556_v57, %s2241_s3 }
 0x7a9   :  { %v559_v59 = vpop.permute.xlu1 %558 }
 0x7aa   :  { %v561_v60 = vadd.f32 %v559_v59, %v551_v58 }
 0x7ac   :  { %2160 = vtanh.f32 %v561_v60 }
 0x7b6   :  { %v2161_v61 = vpop.eup %2160 }
 0x7b7   :  { %564 = vrot.lane.b32.xlu0 %v2161_v61, %s2240_s2 }
 0x829   :  { %v565_v62 = vpop.permute.xlu0 %564 }
 0x82a   :  { %v567_v63 = vmul.f32 %v565_v62, %v550_v55  ;;  %v113_v55 = vld [vmem:[%s2716_s0 + $0x30] sm:$0xff] }
 0x82b   :  { %1796 = vmatprep.mubr.f32.mxu0 %v113_v55 }
 0x82c   :  { %569 = vrot.lane.b32.xlu1 %v567_v63, %s2241_s3  ;;  %1797 = vmatmul.mubr.f32.gmra.mrb[6].mxu0 %v114_v56  ;;  %v66_v63 = vadd.s32 40, %v2398_v40 }
 0x82d   :  { %852 = vmatprep.mubr.f32.mxu0 %v2238_v0 }
 0x89e   :  { %v570_v1 = vpop.permute.xlu1 %569 }
 0x89f   :  { %573 = vst.msk [vmem:[#allocation3 + $0x10] sm:$0xff] %vm260_vm5, %v570_v1  ;;  %1650 = vmatmul.mubr.msk.f32.vlgmr.msra.gmra.mrb[6].mxu1 %vm260_vm5, %v570_v1  ;;  %v74_v1 = vand.u32 7, %v66_v63 }
 0x8a0   :  { %2012 = vmatpush1.bf16.msra.mxu1 %v2346_v17  ;;  %747 = vmatprep.mubr.f32.mxu1 %v2238_v0 }
 0x8a1   :  { %2014 = vmatprep.subr.bf16.mxu1 %v2349_v22  ;;  %vm82_vm10 = vcmp.lt.s32.totalorder %v74_v1, 4 }
 0x8a2   :  { %v104_v2 = vsel %vm82_vm10, %v2409_v46, %v2414_v47 }
 0x8a3   :  { %v223_v4 = vadd.f32 %v1795_v28, %v104_v2 }
 0x8a4   :  { %2016 = vmatpush1.bf16.msra.mxu1 %v2355_v25 }
 0x8a5   :  { %2026 = vmatprep.subr.bf16.mxu1 %v2344_v16 }
 0x972   :  { %v644_v5 = vpop.f32.mrb[6].mxu1 }
 0x973   :  { %v646_v7 = vpop.f32.mrb[7].mxu1 }
 0x974   :  { %v649_v8 = vsel %vm254_vm0, %v644_v5, %v646_v7 }
 0x975   :  { %v650_v9 = vadd.f32 %v649_v8, %v213_v6 }
 0x977   :  { %v651_v10 = vmul.f32 %v650_v9, %v2426_v54 }
 0x979   :  { %2162 = vtanh.f32 %v651_v10 }
 0x983   :  { %v2163_v11 = vpop.eup %2162 }
 0x984   :  { %v653_v12 = vmul.f32 0.5, %v2163_v11 }
 0x986   :  { %v654_v16 = vadd.f32 0.5, %v653_v12 }
 0x988   :  { %v655_v13 = vsel %vm2420_vm4, %v2163_v11, %v654_v16 }
 0x989   :  { %658 = vrot.lane.b32.xlu0 %v655_v13, %s2240_s2  ;;  %v656_v18 = vmul.f32 %v655_v13, %v561_v60  ;;  %v2529_v60 = vpop.f32.mrb[6].mxu0 }
 0x98a   :  { %v227_v61 = vpop.f32.mrb[7].mxu0 }
 0x9fb   :  { %v659_v14 = vpop.permute.xlu0 %658 }
 0x9fc   :  { %v661_v15 = vmul.f32 %v659_v14, %v655_v13  ;;  %v2242_v14 = vmov 0.0|0.0  }
 0x9fe   :  { %663 = vrot.lane.b32.xlu1 %v661_v15, %s2241_s3 }
 0xa70   :  { %v664_v19 = vpop.permute.xlu1 %663 }
 0xa71   :  { %v666_v20 = vadd.f32 %v664_v19, %v656_v18 }
 0xa73   :  { %2164 = vtanh.f32 %v666_v20 }
 0xa7d   :  { %v2165_v24 = vpop.eup %2164 }
 0xa7e   :  { %669 = vrot.lane.b32.xlu0 %v2165_v24, %s2240_s2 }
 0xaf0   :  { %v670_v26 = vpop.permute.xlu0 %669 }
 0xaf1   :  { %v672_v27 = vmul.f32 %v670_v26, %v655_v13 }
 0xaf3   :  { %674 = vrot.lane.b32.xlu1 %v672_v27, %s2241_s3  ;;  %v1101_v27 = vld [vmem:[#allocation3 + $0x10] sm:$0xff] }
 0xb65   :  { %v675_v30 = vpop.permute.xlu1 %674 }
 0xb66   :  { %678 = vst.msk [vmem:[#allocation3 + $0x18] sm:$0xff] %vm260_vm5, %v675_v30  ;;  %1651 = vmatmul.mubr.msk.f32.vlgmr.msra.gmra.mrb[8].mxu1 %vm260_vm5, %v675_v30 }
 0xb67   :  { %2028 = vmatpush1.bf16.msra.mxu1 %v2346_v17  ;;  %957 = vmatprep.mubr.f32.mxu1 %v2238_v0 }
 0xb68   :  { %2030 = vmatprep.subr.bf16.mxu1 %v2349_v22 }
 0xb6b   :  { %2032 = vmatpush1.bf16.msra.mxu1 %v2355_v25 }
 0xb6c   :  { %2041 = vmatprep.subr.bf16.mxu1 %v2242_v14 }
 0xb6d   :  { %v1102_v26 = vld [vmem:[#allocation3 + $0x18] sm:$0xff] }
 0xb6e   :  { %v2557_v28 = vpack.c.bf16 %v1102_v26, %v1101_v27 }
 0xc39   :  { %v749_v35 = vpop.f32.mrb[8].mxu1 }
 0xc3a   :  { %v751_v36 = vpop.f32.mrb[9].mxu1 }
 0xc3b   :  { %v754_v37 = vsel %vm254_vm0, %v749_v35, %v751_v36 }
 0xc3c   :  { %v755_v38 = vadd.f32 %v754_v37, %v218_v34  ;;  %v105_v34 = vsel %vm83_vm11, %v2409_v46, %v2414_v47 }
 0xc3d   :  { %v228_v36 = vadd.f32 %v227_v61, %v105_v34  ;;  %v68_v61 = vadd.s32 56, %v2398_v40  ;;  %v1436_v34 = vld [vmem:[%s2721_s5 + $0x28] sm:$0xff] }
 0xc3e   :  { %v756_v39 = vmul.f32 %v755_v38, %v2426_v54 }
 0xc40   :  { %2166 = vtanh.f32 %v756_v39 }
 0xc4a   :  { %v2167_v41 = vpop.eup %2166 }
 0xc4b   :  { %v758_v42 = vmul.f32 0.5, %v2167_v41 }
 0xc4d   :  { %v759_v43 = vadd.f32 0.5, %v758_v42 }
 0xc4f   :  { %v760_v44 = vsel %vm2420_vm4, %v2167_v41, %v759_v43 }
 0xc50   :  { %763 = vrot.lane.b32.xlu0 %v760_v44, %s2240_s2  ;;  %v761_v51 = vmul.f32 %v760_v44, %v666_v20  ;;  %v1100_v20 = vld [vmem:[#allocation3 + $0x8] sm:$0xff] }
 0xc51   :  { %v2551_v24 = vpack.c.bf16 %v1100_v20, %v1099_v21 }
 0xcc2   :  { %v764_v48 = vpop.permute.xlu0 %763 }
 0xcc3   :  { %v766_v49 = vmul.f32 %v764_v48, %v760_v44 }
 0xcc5   :  { %768 = vrot.lane.b32.xlu1 %v766_v49, %s2241_s3 }
 0xd37   :  { %v769_v52 = vpop.permute.xlu1 %768 }
 0xd38   :  { %v771_v53 = vadd.f32 %v769_v52, %v761_v51 }
 0xd3a   :  { %2168 = vtanh.f32 %v771_v53 }
 0xd44   :  { %v2169_v57 = vpop.eup %2168 }
 0xd45   :  { %774 = vrot.lane.b32.xlu0 %v2169_v57, %s2240_s2 }
 0xdb7   :  { %v775_v58 = vpop.permute.xlu0 %774 }
 0xdb8   :  { %v777_v59 = vmul.f32 %v775_v58, %v760_v44 }
 0xdba   :  { %779 = vrot.lane.b32.xlu1 %v777_v59, %s2241_s3 }
 0xe2c   :  { %v780_v62 = vpop.permute.xlu1 %779 }
 0xe2d   :  { %783 = vst.msk [vmem:[#allocation3 + $0x20] sm:$0xff] %vm260_vm5, %v780_v62  ;;  %1652 = vmatmul.mubr.msk.f32.vlgmr.msra.gmra.mrb[8].mxu0 %vm260_vm5, %v780_v62  ;;  %v76_v62 = vand.u32 7, %v68_v61 }
 0xe2e   :  { %2036 = vmatpush1.bf16.msra.mxu0 %v2346_v17  ;;  %1062 = vmatprep.mubr.f32.mxu0 %v2238_v0 }
 0xe2f   :  { %2038 = vmatprep.subr.bf16.mxu0 %v2349_v22  ;;  %vm84_vm12 = vcmp.lt.s32.totalorder %v76_v62, 4 }
 0xe30   :  { %v106_v63 = vsel %vm84_vm12, %v2409_v46, %v2414_v47 }
 0xe31   :  { %v233_v2 = vadd.f32 %v2529_v60, %v106_v63 }
 0xe32   :  { %2040 = vmatpush1.bf16.msra.mxu0 %v2355_v25 }
 0xe33   :  { %2053 = vmatprep.subr.bf16.mxu0 %v2242_v14 }
 0xe34   :  { %v1103_v29 = vld [vmem:[#allocation3 + $0x20] sm:$0xff] }
 0xf00   :  { %v854_v3 = vpop.f32.mrb[8].mxu0 }
 0xf01   :  { %v856_v5 = vpop.f32.mrb[9].mxu0 }
 0xf02   :  { %v859_v6 = vsel %vm254_vm0, %v854_v3, %v856_v5 }
 0xf03   :  { %v860_v17 = vadd.f32 %v859_v6, %v223_v4 }
 0xf05   :  { %v861_v7 = vmul.f32 %v860_v17, %v2426_v54 }
 0xf07   :  { %2170 = vtanh.f32 %v861_v7 }
 0xf11   :  { %v2171_v22 = vpop.eup %2170 }
 0xf12   :  { %v863_v8 = vmul.f32 0.5, %v2171_v22 }
 0xf14   :  { %v864_v25 = vadd.f32 0.5, %v863_v8 }
 0xf16   :  { %v865_v9 = vsel %vm2420_vm4, %v2171_v22, %v864_v25 }
 0xf17   :  { %868 = vrot.lane.b32.xlu0 %v865_v9, %s2240_s2  ;;  %v866_v12 = vmul.f32 %v865_v9, %v771_v53 }
 0xf89   :  { %v869_v10 = vpop.permute.xlu0 %868 }
 0xf8a   :  { %v871_v11 = vmul.f32 %v869_v10, %v865_v9 }
 0xf8c   :  { %873 = vrot.lane.b32.xlu1 %v871_v11, %s2241_s3 }
 0xffe   :  { %v874_v16 = vpop.permute.xlu1 %873 }
 0xfff   :  { %v876_v13 = vadd.f32 %v874_v16, %v866_v12  ;;  %v1107_v12 = vmul.u32 8, %v2398_v40 }
0x1001   :  { %2172 = vtanh.f32 %v876_v13  ;;  %v1108_v16 = vadd.s32 1, %v1107_v12 }
0x1003   :  { %vm1109_vm14 = vcmp.eq.s32.totalorder %v2404_v45, %v1108_v16  ;;  %v1553_v16 = vld [vmem:[#allocation6 + $0x40] sm:$0xff] }
0x1004   :  { %v1110_v20 = vsel %vm1109_vm14, 1.0, %v2238_v0 }
0x100b   :  { %v2173_v15 = vpop.eup %2172 }
0x100c   :  { %879 = vrot.lane.b32.xlu0 %v2173_v15, %s2240_s2 }
0x107e   :  { %v880_v18 = vpop.permute.xlu0 %879 }
0x107f   :  { %v882_v19 = vmul.f32 %v880_v18, %v865_v9 }
0x1081   :  { %884 = vrot.lane.b32.xlu1 %v882_v19, %s2241_s3 }
0x10f3   :  { %v885_v23 = vpop.permute.xlu1 %884 }
0x10f4   :  { %888 = vst.msk [vmem:[#allocation3 + $0x28] sm:$0xff] %vm260_vm5, %v885_v23  ;;  %1653 = vmatmul.mubr.msk.f32.vlgmr.msra.gmra.mrb[10].mxu1 %vm260_vm5, %v885_v23  ;;  %v1261_v23 = vsub.s32 7, %v2398_v40 }
0x10f5   :  { %2043 = vmatpush3.bf16.msra.mxu1 %v2551_v24  ;;  %1815 = vmatprep.mubr.msk.f32.mxu1 %vm2243_vm13, %v2238_v0 }
0x10f6   :  { %2044 = vmatprep.subr.bf16.mxu1 %v2242_v14  ;;  %v1262_v26 = vmul.u32 8, %v1261_v23  ;;  %v1558_v23 = vld [vmem:[#allocation6 + $0x68] sm:$0xff] }
0x10f8   :  { %v1263_v40 = vadd.s32 5, %v1262_v26 }
0x10f9   :  { %2046 = vmatpush3.bf16.msra.mxu1 %v2557_v28 }
0x10fa   :  { %2047 = vmatprep.subr.bf16.mxu1 %v2242_v14  ;;  %vm1264_vm1 = vcmp.eq.s32.totalorder %v2404_v45, %v1263_v40  ;;  %v1559_v40 = vld [vmem:[#allocation6 + $0x70] sm:$0xff] }
0x10fb   :  { %v1104_v30 = vld [vmem:[#allocation3 + $0x28] sm:$0xff]  ;;  %v1265_v27 = vsel %vm1264_vm1, 1.0, %v2238_v0 }
0x10fc   :  { %v2561_v31 = vpack.c.bf16 %v1104_v30, %v1103_v29  ;;  %v1432_v29 = vld [vmem:[%s2721_s5 + $0x8] sm:$0xff]  ;;  %v1433_v30 = vld [vmem:[%s2721_s5 + $0x10] sm:$0xff] }
0x10fd   :  { %v2093_v33 = vpack.c.bf16 %v1434_v32, %v1433_v30 }
0x10fe   :  { %2049 = vmatpush3.bf16.msra.mxu1 %v2561_v31 }
0x10ff   :  { %2050 = vmatprep.subr.bf16.mxu1 %v2242_v14 }
0x11c7   :  { %v959_v35 = vpop.f32.mrb[10].mxu1 }
0x11c8   :  { %v961_v37 = vpop.f32.mrb[11].mxu1 }
0x11c9   :  { %v964_v38 = vsel %vm254_vm0, %v959_v35, %v961_v37  ;;  %v1438_v37 = vld [vmem:[%s2721_s5 + $0x38] sm:$0xff] }
0x11ca   :  { %v965_v39 = vadd.f32 %v964_v38, %v228_v36  ;;  %v1437_v36 = vld [vmem:[%s2721_s5 + $0x30] sm:$0xff] }
0x11cb   :  { %v2099_v38 = vpack.c.bf16 %v1438_v37, %v1437_v36 }
0x11cc   :  { %v966_v41 = vmul.f32 %v965_v39, %v2426_v54  ;;  %v1439_v39 = vld [vmem:[%s2721_s5 + $0x40] sm:$0xff] }
0x11ce   :  { %2174 = vtanh.f32 %v966_v41  ;;  %v1440_v41 = vld [vmem:[%s2721_s5 + $0x48] sm:$0xff] }
0x11d8   :  { %v2175_v42 = vpop.eup %2174 }
0x11d9   :  { %v968_v43 = vmul.f32 0.5, %v2175_v42 }
0x11db   :  { %v969_v44 = vadd.f32 0.5, %v968_v43  ;;  %v1441_v43 = vld [vmem:[%s2721_s5 + $0x50] sm:$0xff] }
0x11dd   :  { %v970_v48 = vsel %vm2420_vm4, %v2175_v42, %v969_v44  ;;  %v2102_v42 = vpack.c.bf16 %v1440_v41, %v1439_v39  ;;  %v1442_v44 = vld [vmem:[%s2721_s5 + $0x58] sm:$0xff] }
0x11de   :  { %973 = vrot.lane.b32.xlu0 %v970_v48, %s2240_s2  ;;  %v971_v52 = vmul.f32 %v970_v48, %v876_v13  ;;  %v1185_v13 = vadd.s32 3, %v1107_v12 }
0x11e0   :  { %vm1186_vm15 = vcmp.eq.s32.totalorder %v2404_v45, %v1185_v13  ;;  %v1554_v13 = vld [vmem:[#allocation6 + $0x48] sm:$0xff] }
0x11e1   :  { %v1187_v21 = vsel %vm1186_vm15, 1.0, %v2238_v0 }
0x1250   :  { %v974_v49 = vpop.permute.xlu0 %973 }
0x1251   :  { %v976_v51 = vmul.f32 %v974_v49, %v970_v48  ;;  %v1443_v49 = vld [vmem:[%s2721_s5 + $0x60] sm:$0xff] }
0x1253   :  { %978 = vrot.lane.b32.xlu1 %v976_v51, %s2241_s3  ;;  %v1444_v51 = vld [vmem:[%s2721_s5 + $0x68] sm:$0xff] }
0x12c5   :  { %v979_v53 = vpop.permute.xlu1 %978 }
0x12c6   :  { %v981_v55 = vadd.f32 %v979_v53, %v971_v52  ;;  %v2108_v52 = vpack.c.bf16 %v1444_v51, %v1443_v49  ;;  %v1445_v53 = vld [vmem:[%s2721_s5 + $0x70] sm:$0xff] }
0x12c8   :  { %2176 = vtanh.f32 %v981_v55 }
0x12d2   :  { %v2177_v56 = vpop.eup %2176 }
0x12d3   :  { %984 = vrot.lane.b32.xlu0 %v2177_v56, %s2240_s2 }
0x1345   :  { %v985_v57 = vpop.permute.xlu0 %984 }
0x1346   :  { %v987_v58 = vmul.f32 %v985_v57, %v970_v48  ;;  %v2105_v48 = vpack.c.bf16 %v1442_v44, %v1441_v43 }
0x1348   :  { %989 = vrot.lane.b32.xlu1 %v987_v58, %s2241_s3 }
0x13ba   :  { %v990_v59 = vpop.permute.xlu1 %989 }
0x13bb   :  { %993 = vst.msk [vmem:[#allocation3 + $0x30] sm:$0xff] %vm260_vm5, %v990_v59  ;;  %1654 = vmatmul.mubr.msk.f32.vlgmr.msra.gmra.mrb[10].mxu0 %vm260_vm5, %v990_v59 }
0x13bc   :  { %2055 = vmatpush3.bf16.msra.mxu0 %v2551_v24  ;;  %1834 = vmatprep.mubr.msk.f32.mxu0 %vm2243_vm13, %v2238_v0 }
0x13bd   :  { %2056 = vmatprep.subr.bf16.mxu0 %v2242_v14 }
0x13c0   :  { %2058 = vmatpush3.bf16.msra.mxu0 %v2557_v28 }
0x13c1   :  { %2059 = vmatprep.subr.bf16.mxu0 %v2242_v14 }
0x13c2   :  { %v1105_v15 = vld [vmem:[#allocation3 + $0x30] sm:$0xff] }
0x13c4   :  { %2061 = vmatpush3.bf16.msra.mxu0 %v2561_v31 }
0x13c5   :  { %2062 = vmatprep.subr.bf16.mxu0 %v2242_v14 }
0x148e   :  { %v1064_v1 = vpop.f32.mrb[10].mxu0 }
0x148f   :  { %v1066_v3 = vpop.f32.mrb[11].mxu0 }
0x1490   :  { %v1069_v4 = vsel %vm254_vm0, %v1064_v1, %v1066_v3  ;;  %vm1111_vm0 = vcmask 523264  }
0x1491   :  { %v1070_v5 = vadd.f32 %v1069_v4, %v233_v2 }
0x1493   :  { %v1071_v6 = vmul.f32 %v1070_v5, %v2426_v54 }
0x1495   :  { %2178 = vtanh.f32 %v1071_v6 }
0x149f   :  { %v2179_v17 = vpop.eup %2178 }
0x14a0   :  { %v1073_v7 = vmul.f32 0.5, %v2179_v17 }
0x14a2   :  { %v1074_v22 = vadd.f32 0.5, %v1073_v7 }
0x14a4   :  { %v1075_v8 = vsel %vm2420_vm4, %v2179_v17, %v1074_v22  ;;  %v1545_v22 = vld [vmem:[#allocation6] sm:$0xff]  ;;  %vm1638_vm4 = vcmask 23552  }
0x14a5   :  { %1078 = vrot.lane.b32.xlu0 %v1075_v8, %s2240_s2  ;;  %v1076_v60 = vmul.f32 %v1075_v8, %v981_v55  ;;  %v1446_v55 = vld [vmem:[%s2721_s5 + $0x78] sm:$0xff] }
0x14a6   :  { %v2111_v58 = vpack.c.bf16 %v1446_v55, %v1445_v53  ;;  %v1660_v55 = vld [vmem:[%s2724_s8] ss:$0 sm:$0xff] }
0x1517   :  { %v1079_v46 = vpop.permute.xlu0 %1078 }
0x1518   :  { %v1081_v47 = vmul.f32 %v1079_v46, %v1075_v8 }
0x151a   :  { %1083 = vrot.lane.b32.xlu1 %v1081_v47, %s2241_s3  ;;  %v1547_v47 = vld [vmem:[#allocation6 + $0x10] sm:$0xff] }
0x158c   :  { %v1084_v25 = vpop.permute.xlu1 %1083 }
0x158d   :  { %v1086_v9 = vadd.f32 %v1084_v25, %v1076_v60  ;;  %v1548_v60 = vld [vmem:[#allocation6 + $0x18] sm:$0xff] }
0x158e   :  { %v2117_v25 = vpack.c.bf16 %v1548_v60, %v1547_v47 }
0x158f   :  { %2180 = vtanh.f32 %v1086_v9  ;;  %v1549_v9 = vld [vmem:[#allocation6 + $0x20] sm:$0xff] }
0x1599   :  { %v2181_v10 = vpop.eup %2180 }
0x159a   :  { %1089 = vrot.lane.b32.xlu0 %v2181_v10, %s2240_s2  ;;  %v1550_v10 = vld [vmem:[#allocation6 + $0x28] sm:$0xff] }
0x160c   :  { %v1090_v54 = vpop.permute.xlu0 %1089 }
0x160d   :  { %v1092_v11 = vmul.f32 %v1090_v54, %v1075_v8  ;;  %v1546_v8 = vld [vmem:[#allocation6 + $0x8] sm:$0xff]  ;;  %v2120_v54 = vpack.c.bf16 %v1550_v10, %v1549_v9 }
0x160e   :  { %v2114_v46 = vpack.c.bf16 %v1546_v8, %v1545_v22 }
0x160f   :  { %1094 = vrot.lane.b32.xlu1 %v1092_v11, %s2241_s3  ;;  %v1551_v11 = vld [vmem:[#allocation6 + $0x30] sm:$0xff] }
0x1681   :  { %v1095_v50 = vpop.permute.xlu1 %1094 }
0x1682   :  { %1098 = vst.msk [vmem:[#allocation3 + $0x38] sm:$0xff] %vm260_vm5, %v1095_v50  ;;  %v1552_v50 = vld [vmem:[#allocation6 + $0x38] sm:$0xff] }
0x1683   :  { %v2123_v12 = vpack.c.bf16 %v1552_v50, %v1551_v11 }
0x1689   :  { %v1106_v18 = vld [vmem:[#allocation3 + $0x38] sm:$0xff] }
0x168a   :  { %v2051_v19 = vpack.c.bf16 %v1106_v18, %v1105_v15  ;;  %v2126_v15 = vpack.c.bf16 %v1554_v13, %v1553_v16  ;;  %v1555_v18 = vld [vmem:[#allocation6 + $0x50] sm:$0xff] }
0x168c   :  { %2052 = vmatpush3.bf16.msra.mxu1 %v2051_v19  ;;  %2064 = vmatpush3.bf16.msra.mxu0 %v2051_v19 }
0x168d   :  { %2065 = vmatprep.subr.bf16.mxu1 %v2242_v14  ;;  %2077 = vmatprep.subr.bf16.mxu0 %v2242_v14 }
0x168f   :  { %1816 = vmatmul.mubr.msk.f32.vlgmr.msra.gmra.mrb[12].mxu1 %vm1111_vm0, %v1110_v20  ;;  %1835 = vmatmul.mubr.msk.f32.vlgmr.msra.gmra.mrb[12].mxu0 %vm1111_vm0, %v1187_v21  ;;  %v1557_v21 = vld [vmem:[#allocation6 + $0x60] sm:$0xff] }
0x1690   :  { %2067 = vmatpush3.bf16.msra.mxu1 %v2551_v24  ;;  %2079 = vmatpush3.bf16.msra.mxu0 %v2551_v24  ;;  %v1339_v24 = vadd.s32 7, %v1262_v26  ;;  %v2132_v26 = vpack.c.bf16 %v1558_v23, %v1557_v21 }
0x1691   :  { %2068 = vmatprep.subr.bf16.mxu1 %v2242_v14  ;;  %2080 = vmatprep.subr.bf16.mxu0 %v2242_v14 }
0x1692   :  { %1853 = vmatprep.mubr.msk.f32.mxu1 %vm2243_vm13, %v2238_v0  ;;  %1872 = vmatprep.mubr.msk.f32.mxu0 %vm2243_vm13, %v2238_v0  ;;  %vm1340_vm2 = vcmp.eq.s32.totalorder %v2404_v45, %v1339_v24  ;;  %v1431_v45 = vld [vmem:[%s2721_s5] sm:$0xff]  ;;  %v1560_v24 = vld [vmem:[#allocation6 + $0x78] sm:$0xff] }
0x1694   :  { %2070 = vmatpush3.bf16.msra.mxu1 %v2557_v28  ;;  %2082 = vmatpush3.bf16.msra.mxu0 %v2557_v28  ;;  %v1341_v28 = vsel %vm1340_vm2, 1.0, %v2238_v0 }
0x1695   :  { %2071 = vmatprep.subr.bf16.mxu1 %v2242_v14  ;;  %2083 = vmatprep.subr.bf16.mxu0 %v2242_v14 }
0x1698   :  { %2073 = vmatpush3.bf16.msra.mxu1 %v2561_v31  ;;  %2085 = vmatpush3.bf16.msra.mxu0 %v2561_v31  ;;  %v2090_v31 = vpack.c.bf16 %v1432_v29, %v1431_v45 }
0x1699   :  { %2074 = vmatprep.subr.bf16.mxu1 %v2242_v14  ;;  %2086 = vmatprep.subr.bf16.mxu0 %v2242_v14 }
0x169c   :  { %2076 = vmatpush3.bf16.msra.mxu1 %v2051_v19  ;;  %2088 = vmatpush3.bf16.msra.mxu0 %v2051_v19  ;;  %v1556_v19 = vld [vmem:[#allocation6 + $0x58] sm:$0xff] }
0x169d   :  { %2089 = vmatprep.subr.bf16.mxu1 %v2242_v14  ;;  %2113 = vmatprep.subr.bf16.mxu0 %v2242_v14  ;;  %v2129_v20 = vpack.c.bf16 %v1556_v19, %v1555_v18 }
0x169f   :  { %1854 = vmatmul.mubr.msk.f32.vlgmr.msra.gmra.mrb[14].mxu1 %vm1111_vm0, %v1265_v27  ;;  %1873 = vmatmul.mubr.msk.f32.vlgmr.msra.gmra.mrb[14].mxu0 %vm1111_vm0, %v1341_v28  ;;  %v2135_v27 = vpack.c.bf16 %v1560_v24, %v1559_v40  ;;  %v1659_v28 = vld [vmem:[%s2722_s6] ss:$0 sm:$0xff] }
0x16a0   :  { %1907 = vmatprep.mubr.msk.f32.mxu1 %vm2243_vm13, %v2238_v0  ;;  %1942 = vmatprep.mubr.msk.f32.mxu0 %vm2243_vm13, %v2238_v0  ;;  %v1435_v0 = vld [vmem:[%s2721_s5 + $0x20] sm:$0xff] }
0x16a1   :  { %2091 = vmatpush3.bf16.msra.mxu1 %v2090_v31  ;;  %v2096_v35 = vpack.c.bf16 %v1436_v34, %v1435_v0  ;;  %2115 = vmatpush3.bf16.msra.mxu0 %v2114_v46 }
0x16a2   :  { %2092 = vmatprep.subr.bf16.mxu1 %v2242_v14  ;;  %2116 = vmatprep.subr.bf16.mxu0 %v2242_v14 }
0x16a5   :  { %2094 = vmatpush3.bf16.msra.mxu1 %v2093_v33  ;;  %2118 = vmatpush3.bf16.msra.mxu0 %v2117_v25 }
0x16a6   :  { %2095 = vmatprep.subr.bf16.mxu1 %v2242_v14  ;;  %2119 = vmatprep.subr.bf16.mxu0 %v2242_v14 }
0x16a9   :  { %2097 = vmatpush3.bf16.msra.mxu1 %v2096_v35  ;;  %2121 = vmatpush3.bf16.msra.mxu0 %v2120_v54 }
0x16aa   :  { %2098 = vmatprep.subr.bf16.mxu1 %v2242_v14  ;;  %2122 = vmatprep.subr.bf16.mxu0 %v2242_v14 }
0x16ad   :  { %2100 = vmatpush3.bf16.msra.mxu1 %v2099_v38  ;;  %2124 = vmatpush3.bf16.msra.mxu0 %v2123_v12 }
0x16ae   :  { %2101 = vmatprep.subr.bf16.mxu1 %v2242_v14  ;;  %2125 = vmatprep.subr.bf16.mxu0 %v2242_v14 }
0x16b1   :  { %2103 = vmatpush3.bf16.msra.mxu1 %v2102_v42  ;;  %2127 = vmatpush3.bf16.msra.mxu0 %v2126_v15 }
0x16b2   :  { %2104 = vmatprep.subr.bf16.mxu1 %v2242_v14  ;;  %2128 = vmatprep.subr.bf16.mxu0 %v2242_v14 }
0x16b5   :  { %2106 = vmatpush3.bf16.msra.mxu1 %v2105_v48  ;;  %2130 = vmatpush3.bf16.msra.mxu0 %v2129_v20 }
0x16b6   :  { %2107 = vmatprep.subr.bf16.mxu1 %v2242_v14  ;;  %2131 = vmatprep.subr.bf16.mxu0 %v2242_v14 }
0x16b9   :  { %2109 = vmatpush3.bf16.msra.mxu1 %v2108_v52  ;;  %2133 = vmatpush3.bf16.msra.mxu0 %v2132_v26 }
0x16ba   :  { %2110 = vmatprep.subr.bf16.mxu1 %v2242_v14  ;;  %2134 = vmatprep.subr.bf16.mxu0 %v2242_v14 }
0x16bd   :  { %2112 = vmatpush3.bf16.msra.mxu1 %v2111_v58  ;;  %2136 = vmatpush3.bf16.msra.mxu0 %v2135_v27 }
0x1762   :  { %v1181_v56 = vpop.f32.mrb[12].mxu1  ;;  %v1257_v57 = vpop.f32.mrb[12].mxu0 }
0x1763   :  { %1416 = vrot.lane.b32.xlu0 %v1257_v57, %s2241_s3  ;;  %v1817_v59 = vpop.f32.mrb[13].mxu1  ;;  %v1836_v61 = vpop.f32.mrb[13].mxu0 }
0x1772   :  { %v1335_v62 = vpop.f32.mrb[14].mxu1  ;;  %v1411_v63 = vpop.f32.mrb[14].mxu0 }
0x1773   :  { %v1874_v1 = vpop.f32.mrb[15].mxu0  ;;  %1420 = vrot.lane.b32.xlu1 %v1335_v62, %s2240_s2  ;;  %v1855_v2 = vpop.f32.mrb[15].mxu1  ;;  %1424 = vrot.lane.b32.xlu0 %v1411_v63, %s2244_s25 }
0x17d5   :  { %v1417_v3 = vpop.permute.xlu0 %1416 }
0x17d6   :  { %v1427_v4 = vsel %vm260_vm5, %v1181_v56, %v1417_v3 }
0x17e5   :  { %v1421_v5 = vpop.permute.xlu1 %1420  ;;  %v1425_v6 = vpop.permute.xlu0 %1424 }
0x17e6   :  { %v1428_v17 = vsel %vm1111_vm0, %v1427_v4, %v1421_v5 }
0x17e7   :  { %v1430_v7 = vsel %vm1429_vm3, %v1428_v17, %v1425_v6 }
0x17e8   :  { %1908 = vmatmul.mubr.f32.vlgmr.msra.gmra.mrb[16].mxu1 %v1430_v7 }
0x18bb   :  { %v1520_v45 = vpop.f32.mrb[16].mxu1 }
0x18bc   :  { %v1521_v29 = vadd.f32 %v1659_v28, %v1520_v45  ;;  %v1909_v30 = vpop.f32.mrb[17].mxu1 }
0x18be   :  { %v1524_v31 = vrot.slane %v1521_v29, 4 }
0x18c0   :  { %v1525_v32 = vadd.f32 %v1524_v31, %v1521_v29 }
0x18c2   :  { %v1526_v33 = vrot.slane %v1525_v32, 2 }
0x18c4   :  { %v1527_v0 = vadd.f32 %v1526_v33, %v1525_v32 }
0x18c6   :  { %v1528_v34 = vrot.slane %v1527_v0, 1 }
0x18c8   :  { %v1529_v35 = vadd.f32 %v1528_v34, %v1527_v0 }
0x18ca   :  { %v1531_v36 = vmul.f32 0.125, %v1529_v35 }
0x18cc   :  { %v1532_v37 = vsub.f32 %v1521_v29, %v1531_v36 }
0x18ce   :  { %v1533_v14 = vmul.f32 %v1532_v37, %v1532_v37 }
0x18d0   :  { %v1534_v38 = vrot.slane %v1533_v14, 4 }
0x18d2   :  { %v1535_v39 = vadd.f32 %v1534_v38, %v1533_v14 }
0x18d4   :  { %v1536_v41 = vrot.slane %v1535_v39, 2 }
0x18d6   :  { %v1537_v42 = vadd.f32 %v1536_v41, %v1535_v39 }
0x18d8   :  { %v1538_v43 = vrot.slane %v1537_v42, 1 }
0x18da   :  { %v1539_v44 = vadd.f32 %v1538_v43, %v1537_v42 }
0x18dc   :  { %v1540_v48 = vmul.f32 0.125, %v1539_v44 }
0x18de   :  { %v1541_v49 = vadd.f32 1e-05, %v1540_v48 }
0x18e0   :  { %2182 = vrsqrt.f32 %v1541_v49 }
0x18ea   :  { %v2183_v51 = vpop.eup %2182 }
0x18eb   :  { %v1543_v52 = vmul.f32 %v2183_v51, %v1532_v37 }
0x18ed   :  { %v1544_v53 = vmax.f32 %v1543_v52, 0.0 }
0x18ef   :  { %1943 = vmatmul.mubr.f32.vlgmr.msra.gmra.mrb[16].mxu0 %v1544_v53 }
0x19c2   :  { %v1634_v56 = vpop.f32.mrb[16].mxu0 }
0x19c3   :  { %v1635_v57 = vadd.f32 %v1660_v55, %v1634_v56  ;;  %v1944_v58 = vpop.f32.mrb[17].mxu0 }
0x19c5   :  { %1639 = vst.msk [vmem:[%s2725_s9] sm:$0xff] %vm1638_vm4, %v1635_v57 }
0x19c6   :  { %1644 = vsyncpa [#allocation5], 1 }
0x19c7   :  { %1645 = vsyncpa [#allocation7], 1 }

</bundles_post_ra>
